<compile_context>
chip_gen: v6e
topology: v6e:2x2x1
jax: 0.10.0
libtpu: 0.0.40
codegen_flags: <defaults>
</compile_context>

<pallas_src>
import functools
import math

import jax
import jax.numpy as jnp
from jax.experimental import pallas as pl
from jax.experimental.pallas import tpu as pltpu


def _mhca_kernel(x1_ref, x2_ref, wq_ref, bq_ref, wk_ref, bk_ref,
                 wv_ref, bv_ref, wp_ref, out_ref, *,
                 n_heads, head_dim, b_blk, t_tgt, t_src):
    C = n_heads * head_dim
    scale = 1.0 / math.sqrt(head_dim)

    # Flatten the batch block so the projections run as (B_blk*T, C) @ (C, d).
    x1 = x1_ref[...].reshape(b_blk * t_tgt, C)        # bf16
    x2 = x2_ref[...].reshape(b_blk * t_src, C)        # bf16

    acc = jnp.zeros((b_blk * t_tgt, C), jnp.float32)

    # Heads unrolled at trace time (n_heads is small and static).  Per-head
    # weight slabs keep all head selection on the MXU N dim -- no 8-lane-wide
    # slices of a C-wide q/k/v inside the kernel.
    for h in range(n_heads):
        # Projections on the MXU, f32 accumulation; softmax scale folded into q
        # (one cheap VPU mul instead of scaling every score tile).
        qh = (jnp.dot(x1, wq_ref[h], preferred_element_type=jnp.float32)
              + bq_ref[h]) * scale                                 # (B*Tt, d) f32
        kh = jnp.dot(x2, wk_ref[h], preferred_element_type=jnp.float32) + bk_ref[h]
        vh = jnp.dot(x2, wv_ref[h], preferred_element_type=jnp.float32) + bv_ref[h]

        qh = qh.reshape(b_blk, t_tgt, head_dim).astype(jnp.bfloat16)
        kh = kh.reshape(b_blk, t_src, head_dim).astype(jnp.bfloat16)
        vh = vh.reshape(b_blk, t_src, head_dim).astype(jnp.bfloat16)

        # scores + numerically-stable softmax (f32), batched over the batch block.
        s = jnp.einsum('bqd,bkd->bqk', qh, kh,
                       preferred_element_type=jnp.float32)         # (B, Tt, Ts)
        m = jnp.max(s, axis=-1, keepdims=True)
        e = jnp.exp(s - m)
        p = e * pl.reciprocal(jnp.sum(e, axis=-1, keepdims=True), approx=True)
        # TODO(synk): attention dropout omitted (nn.Dropout is identity in eval mode).

        oh = jnp.einsum('bqk,bkd->bqd', p.astype(jnp.bfloat16), vh,
                        preferred_element_type=jnp.float32)        # (B, Tt, d)

        # concat_heads(o) @ Wp  ==  sum_h  o_h @ Wp[h]   (Wp pre-split per head)
        oh2 = oh.reshape(b_blk * t_tgt, head_dim).astype(jnp.bfloat16)
        acc = acc + jnp.dot(oh2, wp_ref[h], preferred_element_type=jnp.float32)

    out_ref[...] = acc.reshape(b_blk, t_tgt, C).astype(out_ref.dtype)


def _pick_batch_block(B, T_tgt):
    """Batch-block size: target >=128 fused rows per grid step (fills the MXU
    M dim), keep >=2 grid steps when B allows (v7x second TensorCore), and
    divide B exactly so no partially-masked blocks are needed."""
    target = max(1, pl.cdiv(128, T_tgt))
    b_blk = min(B, target)
    if B > 1:
        b_blk = min(b_blk, pl.cdiv(B, 2))
    while B % b_blk:
        b_blk -= 1
    return b_blk


def multi_head_cross_attention(x1, x2, wq, bq, wk, bk, wv, bv, wp, *,
                               n_heads, compute_dtype=jnp.bfloat16):
    """x1: (B, T_tgt, C), x2: (B, T_src, C); weights stored as (in, out)."""
    B, T_tgt, C = x1.shape
    B2, T_src, C2 = x2.shape
    assert B == B2 and C == C2 and C % n_heads == 0
    d = C // n_heads

    b_blk = _pick_batch_block(B, T_tgt)
    n_blocks = B // b_blk

    # Per-head weight slabs (removes in-kernel lane-axis head slicing):
    #   Wq/Wk/Wv: (C, C) -> (n_heads, C, d)   head h uses output cols h*d:(h+1)*d
    #   Wp:       (C, C) -> (n_heads, d, C)   head h uses input rows  h*d:(h+1)*d
    #   biases:   (C,)   -> (n_heads, 1, d)
    def split_out(w):
        return jnp.transpose(w.reshape(C, n_heads, d), (1, 0, 2)).astype(compute_dtype)

    wq3, wk3, wv3 = split_out(wq), split_out(wk), split_out(wv)
    wp3 = wp.reshape(n_heads, d, C).astype(compute_dtype)
    bq3 = bq.reshape(n_heads, 1, d).astype(compute_dtype)
    bk3 = bk.reshape(n_heads, 1, d).astype(compute_dtype)
    bv3 = bv.reshape(n_heads, 1, d).astype(compute_dtype)

    x1c = x1.astype(compute_dtype)
    x2c = x2.astype(compute_dtype)

    kernel = functools.partial(_mhca_kernel, n_heads=n_heads, head_dim=d,
                               b_blk=b_blk, t_tgt=T_tgt, t_src=T_src)

    rep = lambda b: (0, 0, 0)          # weights / biases replicated per grid step

    # Single-buffer the replicated weight operands once double-buffering them
    # would pressure VMEM (matters on v7x's 64 MiB for large C); their index_map
    # is constant so there is nothing to prefetch anyway.
    itemsize = jnp.dtype(compute_dtype).itemsize
    big_weights = 4 * C * C * itemsize >= (8 << 20)

    def w_spec(shape):
        if big_weights:
            return pl.BlockSpec(shape, rep, pipeline_mode=pl.Buffered(1))
        return pl.BlockSpec(shape, rep)

    flops = (2 * B * (T_tgt + 2 * T_src) * C * C        # q/k/v projections
             + 4 * B * T_tgt * T_src * C                # scores + attn @ v
             + 2 * B * T_tgt * C * C)                   # output projection
    transcendentals = B * n_heads * T_tgt * (T_src + 1)  # exp + approx recip
    bytes_accessed = (itemsize * (B * T_tgt * C + B * T_src * C   # x1, x2 (bf16)
                                  + 4 * C * C + 3 * C)            # weights + biases
                      + x1.dtype.itemsize * B * T_tgt * C)        # output

    return pl.pallas_call(
        kernel,
        out_shape=jax.ShapeDtypeStruct((B, T_tgt, C), x1.dtype),
        grid_spec=pltpu.PrefetchScalarGridSpec(
            num_scalar_prefetch=0,
            grid=(n_blocks,),
            in_specs=[
                pl.BlockSpec((b_blk, T_tgt, C), lambda b: (b, 0, 0)),   # x1 block
                pl.BlockSpec((b_blk, T_src, C), lambda b: (b, 0, 0)),   # x2 block
                w_spec((n_heads, C, d)),                                # Wq
                pl.BlockSpec((n_heads, 1, d), rep),                     # bq
                w_spec((n_heads, C, d)),                                # Wk
                pl.BlockSpec((n_heads, 1, d), rep),                     # bk
                w_spec((n_heads, C, d)),                                # Wv
                pl.BlockSpec((n_heads, 1, d), rep),                     # bv
                w_spec((n_heads, d, C)),                                # Wp (no bias)
            ],
            out_specs=pl.BlockSpec((b_blk, T_tgt, C), lambda b: (b, 0, 0)),
        ),
        compiler_params=pltpu.CompilerParams(
            dimension_semantics=("parallel",),           # megacore / v7x 2-TC split
            vmem_limit_bytes=32 * 1024 * 1024,           # explicit, safe on v7x 64 MiB
        ),
        cost_estimate=pl.CostEstimate(
            flops=flops,
            transcendentals=transcendentals,
            bytes_accessed=bytes_accessed,
        ),
    )(x1c, x2c, wq3, bq3, wk3, bk3, wv3, bv3, wp3)


def mhca_ref(x1, x2, wq, bq, wk, bk, wv, bv, wp, n_heads):
    """Pure-JAX f32 reference matching the PyTorch forward (eval mode)."""
    B, T_tgt, C = x1.shape
    _, T_src, _ = x2.shape
    d = C // n_heads
    q = (x1 @ wq + bq).reshape(B, T_tgt, n_heads, d).transpose(0, 2, 1, 3)
    k = (x2 @ wk + bk).reshape(B, T_src, n_heads, d).transpose(0, 2, 1, 3)
    v = (x2 @ wv + bv).reshape(B, T_src, n_heads, d).transpose(0, 2, 1, 3)
    s = jnp.einsum('bhtd,bhsd->bhts', q, k) * (d ** -0.5)
    p = jax.nn.softmax(s, axis=-1)
    o = jnp.einsum('bhts,bhsd->bhtd', p, v)
    o = o.transpose(0, 2, 1, 3).reshape(B, T_tgt, C)
    return o @ wp


if __name__ == "__main__":
    # Module config: n_heads=4, embed_dim=32 (head_dim=8); small demo sequences.
    # batch=8 so the batch-blocked grid path is exercised (b_blk=4, 2 grid steps).
    n_heads = 4
    embed_dim = 32
    T_tgt = 8        # x_1 (target / query) sequence length
    T_src = 16       # x_2 (source / key-value) sequence length
    batch = 8

    key = jax.random.PRNGKey(0)
    ks = jax.random.split(key, 9)
    wq = jax.random.normal(ks[0], (embed_dim, embed_dim), jnp.float32) * 0.1
    bq = jax.random.normal(ks[1], (embed_dim,), jnp.float32) * 0.1
    wk = jax.random.normal(ks[2], (embed_dim, embed_dim), jnp.float32) * 0.1
    bk = jax.random.normal(ks[3], (embed_dim,), jnp.float32) * 0.1
    wv = jax.random.normal(ks[4], (embed_dim, embed_dim), jnp.float32) * 0.1
    bv = jax.random.normal(ks[5], (embed_dim,), jnp.float32) * 0.1
    wp = jax.random.normal(ks[6], (embed_dim, embed_dim), jnp.float32) * 0.1
    x1 = jax.random.normal(ks[7], (batch, T_tgt, embed_dim), jnp.float32)
    x2 = jax.random.normal(ks[8], (batch, T_src, embed_dim), jnp.float32)

    out = multi_head_cross_attention(
        x1, x2, wq, bq, wk, bk, wv, bv, wp, n_heads=n_heads)
    out = jax.block_until_ready(out)

    with jax.default_matmul_precision("highest"):
        ref = mhca_ref(x1, x2, wq, bq, wk, bk, wv, bv, wp, n_heads)
        ref = jax.block_until_ready(ref)

    assert out.shape == (batch, T_tgt, embed_dim), out.shape
    # bf16 MXU inputs + approx reciprocal => relaxed tolerance vs the f32 reference.
    assert jnp.allclose(out, ref, atol=2e-2, rtol=2e-2), (
        "mismatch vs reference; max abs diff = %f" % float(jnp.max(jnp.abs(out - ref))))

    print("KERNEL_OK")
</pallas_src>

<mosaic_0001>
module attributes {stable_mosaic.version = 11 : i64} {
  func.func @_mhca_kernel(%arg0: i32, %arg1: memref<4x8x32xbf16, #tpu.memory_space<vmem>>, %arg2: memref<4x16x32xbf16, #tpu.memory_space<vmem>>, %arg3: memref<4x32x8xbf16, #tpu.memory_space<vmem>>, %arg4: memref<4x1x8xbf16, #tpu.memory_space<vmem>>, %arg5: memref<4x32x8xbf16, #tpu.memory_space<vmem>>, %arg6: memref<4x1x8xbf16, #tpu.memory_space<vmem>>, %arg7: memref<4x32x8xbf16, #tpu.memory_space<vmem>>, %arg8: memref<4x1x8xbf16, #tpu.memory_space<vmem>>, %arg9: memref<4x8x32xbf16, #tpu.memory_space<vmem>>, %arg10: memref<4x8x32xf32, #tpu.memory_space<vmem>>) attributes {dimension_semantics = [#tpu.dimension_semantics<parallel>], iteration_bounds = array<i64: 2>, scalar_prefetch = 0 : i64, scratch_operands = 0 : i64, tpu.core_type = #tpu.core_type<tc>, window_params = [{transform_indices = @transform_0, window_bounds = array<i64: 4, 8, 32>}, {transform_indices = @transform_1, window_bounds = array<i64: 4, 16, 32>}, {pipeline_mode = #tpu.pipeline_mode<synchronous>, transform_indices = @transform_2, window_bounds = array<i64: 4, 32, 8>}, {pipeline_mode = #tpu.pipeline_mode<synchronous>, transform_indices = @transform_3, window_bounds = array<i64: 4, 1, 8>}, {pipeline_mode = #tpu.pipeline_mode<synchronous>, transform_indices = @transform_4, window_bounds = array<i64: 4, 32, 8>}, {pipeline_mode = #tpu.pipeline_mode<synchronous>, transform_indices = @transform_5, window_bounds = array<i64: 4, 1, 8>}, {pipeline_mode = #tpu.pipeline_mode<synchronous>, transform_indices = @transform_6, window_bounds = array<i64: 4, 32, 8>}, {pipeline_mode = #tpu.pipeline_mode<synchronous>, transform_indices = @transform_7, window_bounds = array<i64: 4, 1, 8>}, {pipeline_mode = #tpu.pipeline_mode<synchronous>, transform_indices = @transform_8, window_bounds = array<i64: 4, 8, 32>}, {transform_indices = @transform_9, window_bounds = array<i64: 4, 8, 32>}]} {
    %c0 = arith.constant 0 : index
    %c0_0 = arith.constant 0 : index
    %c0_1 = arith.constant 0 : index
    %0 = vector.load %arg1[%c0, %c0_0, %c0_1] : memref<4x8x32xbf16, #tpu.memory_space<vmem>>, vector<4x8x32xbf16>
    %1 = vector.shape_cast %0 : vector<4x8x32xbf16> to vector<32x32xbf16>
    %c0_2 = arith.constant 0 : index
    %c0_3 = arith.constant 0 : index
    %c0_4 = arith.constant 0 : index
    %2 = vector.load %arg2[%c0_2, %c0_3, %c0_4] : memref<4x16x32xbf16, #tpu.memory_space<vmem>>, vector<4x16x32xbf16>
    %3 = vector.shape_cast %2 : vector<4x16x32xbf16> to vector<64x32xbf16>
    %cst = arith.constant 0.000000e+00 : f32
    %4 = vector.broadcast %cst : f32 to vector<32x32xf32>
    %c0_5 = arith.constant 0 : index
    %c0_6 = arith.constant 0 : index
    %c0_7 = arith.constant 0 : index
    %5 = vector.load %arg3[%c0_5, %c0_6, %c0_7] : memref<4x32x8xbf16, #tpu.memory_space<vmem>>, vector<1x32x8xbf16>
    %6 = vector.shape_cast %5 : vector<1x32x8xbf16> to vector<32x8xbf16>
    %cst_8 = arith.constant dense<0.000000e+00> : vector<32x8xf32>
    %7 = tpu.matmul %1, %6, %cst_8 {dimension_numbers = #tpu.dot_dimension_numbers<[1], [0], [0], [1], [0, 0, 1, 1], [], []>} : vector<32x32xbf16>, vector<32x8xbf16>, vector<32x8xf32> -> vector<32x8xf32>
    %c0_9 = arith.constant 0 : index
    %c0_10 = arith.constant 0 : index
    %c0_11 = arith.constant 0 : index
    %8 = vector.load %arg4[%c0_9, %c0_10, %c0_11] : memref<4x1x8xbf16, #tpu.memory_space<vmem>>, vector<1x1x8xbf16>
    %9 = vector.shape_cast %8 : vector<1x1x8xbf16> to vector<1x8xbf16>
    %10 = arith.extf %9 : vector<1x8xbf16> to vector<1x8xf32>
    %11 = vector.broadcast %10 : vector<1x8xf32> to vector<32x8xf32>
    %12 = arith.addf %7, %11 : vector<32x8xf32>
    %cst_12 = arith.constant 0.353553385 : f32
    %13 = vector.broadcast %cst_12 : f32 to vector<32x8xf32>
    %14 = arith.mulf %12, %13 : vector<32x8xf32>
    %c0_13 = arith.constant 0 : index
    %c0_14 = arith.constant 0 : index
    %c0_15 = arith.constant 0 : index
    %15 = vector.load %arg5[%c0_13, %c0_14, %c0_15] : memref<4x32x8xbf16, #tpu.memory_space<vmem>>, vector<1x32x8xbf16>
    %16 = vector.shape_cast %15 : vector<1x32x8xbf16> to vector<32x8xbf16>
    %cst_16 = arith.constant dense<0.000000e+00> : vector<64x8xf32>
    %17 = tpu.matmul %3, %16, %cst_16 {dimension_numbers = #tpu.dot_dimension_numbers<[1], [0], [0], [1], [0, 0, 1, 1], [], []>} : vector<64x32xbf16>, vector<32x8xbf16>, vector<64x8xf32> -> vector<64x8xf32>
    %c0_17 = arith.constant 0 : index
    %c0_18 = arith.constant 0 : index
    %c0_19 = arith.constant 0 : index
    %18 = vector.load %arg6[%c0_17, %c0_18, %c0_19] : memref<4x1x8xbf16, #tpu.memory_space<vmem>>, vector<1x1x8xbf16>
    %19 = vector.shape_cast %18 : vector<1x1x8xbf16> to vector<1x8xbf16>
    %20 = arith.extf %19 : vector<1x8xbf16> to vector<1x8xf32>
    %21 = vector.broadcast %20 : vector<1x8xf32> to vector<64x8xf32>
    %22 = arith.addf %17, %21 : vector<64x8xf32>
    %c0_20 = arith.constant 0 : index
    %c0_21 = arith.constant 0 : index
    %c0_22 = arith.constant 0 : index
    %23 = vector.load %arg7[%c0_20, %c0_21, %c0_22] : memref<4x32x8xbf16, #tpu.memory_space<vmem>>, vector<1x32x8xbf16>
    %24 = vector.shape_cast %23 : vector<1x32x8xbf16> to vector<32x8xbf16>
    %cst_23 = arith.constant dense<0.000000e+00> : vector<64x8xf32>
    %25 = tpu.matmul %3, %24, %cst_23 {dimension_numbers = #tpu.dot_dimension_numbers<[1], [0], [0], [1], [0, 0, 1, 1], [], []>} : vector<64x32xbf16>, vector<32x8xbf16>, vector<64x8xf32> -> vector<64x8xf32>
    %c0_24 = arith.constant 0 : index
    %c0_25 = arith.constant 0 : index
    %c0_26 = arith.constant 0 : index
    %26 = vector.load %arg8[%c0_24, %c0_25, %c0_26] : memref<4x1x8xbf16, #tpu.memory_space<vmem>>, vector<1x1x8xbf16>
    %27 = vector.shape_cast %26 : vector<1x1x8xbf16> to vector<1x8xbf16>
    %28 = arith.extf %27 : vector<1x8xbf16> to vector<1x8xf32>
    %29 = vector.broadcast %28 : vector<1x8xf32> to vector<64x8xf32>
    %30 = arith.addf %25, %29 : vector<64x8xf32>
    %31 = vector.shape_cast %14 : vector<32x8xf32> to vector<4x8x8xf32>
    %32 = arith.truncf %31 : vector<4x8x8xf32> to vector<4x8x8xbf16>
    %33 = vector.shape_cast %22 : vector<64x8xf32> to vector<4x16x8xf32>
    %34 = arith.truncf %33 : vector<4x16x8xf32> to vector<4x16x8xbf16>
    %35 = vector.shape_cast %30 : vector<64x8xf32> to vector<4x16x8xf32>
    %36 = arith.truncf %35 : vector<4x16x8xf32> to vector<4x16x8xbf16>
    "tpu.trace_start"() <{level = 10 : i32, message = "bqd,bkd->bqk"}> : () -> ()
    %cst_27 = arith.constant dense<0.000000e+00> : vector<4x8x16xf32>
    %37 = tpu.matmul %32, %34, %cst_27 {dimension_numbers = #tpu.dot_dimension_numbers<[2], [2], [1], [1], [0, 0, 0, 1, 1, 1], [0], [0]>} : vector<4x8x8xbf16>, vector<4x16x8xbf16>, vector<4x8x16xf32> -> vector<4x8x16xf32>
    "tpu.trace_stop"() : () -> ()
    %cst_28 = arith.constant dense<0xFF800000> : vector<4x8xf32>
    %38 = vector.multi_reduction <maximumf>, %37, %cst_28 [2] : vector<4x8x16xf32> to vector<4x8xf32>
    %39 = vector.shape_cast %38 : vector<4x8xf32> to vector<4x8x1xf32>
    %40 = vector.broadcast %39 : vector<4x8x1xf32> to vector<4x8x16xf32>
    %41 = arith.subf %37, %40 : vector<4x8x16xf32>
    %42 = math.exp %41 : vector<4x8x16xf32>
    %cst_29 = arith.constant dense<0.000000e+00> : vector<4x8xf32>
    %43 = vector.multi_reduction <add>, %42, %cst_29 [2] : vector<4x8x16xf32> to vector<4x8xf32>
    %44 = vector.shape_cast %43 : vector<4x8xf32> to vector<4x8x1xf32>
    %45 = tpu.reciprocal %44 {approx = true} : vector<4x8x1xf32> -> vector<4x8x1xf32>
    %46 = vector.broadcast %45 : vector<4x8x1xf32> to vector<4x8x16xf32>
    %47 = arith.mulf %42, %46 : vector<4x8x16xf32>
    %48 = arith.truncf %47 : vector<4x8x16xf32> to vector<4x8x16xbf16>
    "tpu.trace_start"() <{level = 10 : i32, message = "bqk,bkd->bqd"}> : () -> ()
    %cst_30 = arith.constant dense<0.000000e+00> : vector<4x8x8xf32>
    %49 = tpu.matmul %48, %36, %cst_30 {dimension_numbers = #tpu.dot_dimension_numbers<[2], [1], [1], [2], [0, 0, 0, 1, 1, 2], [0], [0]>} : vector<4x8x16xbf16>, vector<4x16x8xbf16>, vector<4x8x8xf32> -> vector<4x8x8xf32>
    "tpu.trace_stop"() : () -> ()
    %50 = vector.shape_cast %49 : vector<4x8x8xf32> to vector<32x8xf32>
    %51 = arith.truncf %50 : vector<32x8xf32> to vector<32x8xbf16>
    %c0_31 = arith.constant 0 : index
    %c0_32 = arith.constant 0 : index
    %c0_33 = arith.constant 0 : index
    %52 = vector.load %arg9[%c0_31, %c0_32, %c0_33] : memref<4x8x32xbf16, #tpu.memory_space<vmem>>, vector<1x8x32xbf16>
    %53 = vector.shape_cast %52 : vector<1x8x32xbf16> to vector<8x32xbf16>
    %cst_34 = arith.constant dense<0.000000e+00> : vector<32x32xf32>
    %54 = tpu.matmul %51, %53, %cst_34 {dimension_numbers = #tpu.dot_dimension_numbers<[1], [0], [0], [1], [0, 0, 1, 1], [], []>} : vector<32x8xbf16>, vector<8x32xbf16>, vector<32x32xf32> -> vector<32x32xf32>
    %55 = arith.addf %4, %54 : vector<32x32xf32>
    %c1 = arith.constant 1 : index
    %c0_35 = arith.constant 0 : index
    %c0_36 = arith.constant 0 : index
    %56 = vector.load %arg3[%c1, %c0_35, %c0_36] : memref<4x32x8xbf16, #tpu.memory_space<vmem>>, vector<1x32x8xbf16>
    %57 = vector.shape_cast %56 : vector<1x32x8xbf16> to vector<32x8xbf16>
    %cst_37 = arith.constant dense<0.000000e+00> : vector<32x8xf32>
    %58 = tpu.matmul %1, %57, %cst_37 {dimension_numbers = #tpu.dot_dimension_numbers<[1], [0], [0], [1], [0, 0, 1, 1], [], []>} : vector<32x32xbf16>, vector<32x8xbf16>, vector<32x8xf32> -> vector<32x8xf32>
    %c1_38 = arith.constant 1 : index
    %c0_39 = arith.constant 0 : index
    %c0_40 = arith.constant 0 : index
    %59 = vector.load %arg4[%c1_38, %c0_39, %c0_40] : memref<4x1x8xbf16, #tpu.memory_space<vmem>>, vector<1x1x8xbf16>
    %60 = vector.shape_cast %59 : vector<1x1x8xbf16> to vector<1x8xbf16>
    %61 = arith.extf %60 : vector<1x8xbf16> to vector<1x8xf32>
    %62 = vector.broadcast %61 : vector<1x8xf32> to vector<32x8xf32>
    %63 = arith.addf %58, %62 : vector<32x8xf32>
    %cst_41 = arith.constant 0.353553385 : f32
    %64 = vector.broadcast %cst_41 : f32 to vector<32x8xf32>
    %65 = arith.mulf %63, %64 : vector<32x8xf32>
    %c1_42 = arith.constant 1 : index
    %c0_43 = arith.constant 0 : index
    %c0_44 = arith.constant 0 : index
    %66 = vector.load %arg5[%c1_42, %c0_43, %c0_44] : memref<4x32x8xbf16, #tpu.memory_space<vmem>>, vector<1x32x8xbf16>
    %67 = vector.shape_cast %66 : vector<1x32x8xbf16> to vector<32x8xbf16>
    %cst_45 = arith.constant dense<0.000000e+00> : vector<64x8xf32>
    %68 = tpu.matmul %3, %67, %cst_45 {dimension_numbers = #tpu.dot_dimension_numbers<[1], [0], [0], [1], [0, 0, 1, 1], [], []>} : vector<64x32xbf16>, vector<32x8xbf16>, vector<64x8xf32> -> vector<64x8xf32>
    %c1_46 = arith.constant 1 : index
    %c0_47 = arith.constant 0 : index
    %c0_48 = arith.constant 0 : index
    %69 = vector.load %arg6[%c1_46, %c0_47, %c0_48] : memref<4x1x8xbf16, #tpu.memory_space<vmem>>, vector<1x1x8xbf16>
    %70 = vector.shape_cast %69 : vector<1x1x8xbf16> to vector<1x8xbf16>
    %71 = arith.extf %70 : vector<1x8xbf16> to vector<1x8xf32>
    %72 = vector.broadcast %71 : vector<1x8xf32> to vector<64x8xf32>
    %73 = arith.addf %68, %72 : vector<64x8xf32>
    %c1_49 = arith.constant 1 : index
    %c0_50 = arith.constant 0 : index
    %c0_51 = arith.constant 0 : index
    %74 = vector.load %arg7[%c1_49, %c0_50, %c0_51] : memref<4x32x8xbf16, #tpu.memory_space<vmem>>, vector<1x32x8xbf16>
    %75 = vector.shape_cast %74 : vector<1x32x8xbf16> to vector<32x8xbf16>
    %cst_52 = arith.constant dense<0.000000e+00> : vector<64x8xf32>
    %76 = tpu.matmul %3, %75, %cst_52 {dimension_numbers = #tpu.dot_dimension_numbers<[1], [0], [0], [1], [0, 0, 1, 1], [], []>} : vector<64x32xbf16>, vector<32x8xbf16>, vector<64x8xf32> -> vector<64x8xf32>
    %c1_53 = arith.constant 1 : index
    %c0_54 = arith.constant 0 : index
    %c0_55 = arith.constant 0 : index
    %77 = vector.load %arg8[%c1_53, %c0_54, %c0_55] : memref<4x1x8xbf16, #tpu.memory_space<vmem>>, vector<1x1x8xbf16>
    %78 = vector.shape_cast %77 : vector<1x1x8xbf16> to vector<1x8xbf16>
    %79 = arith.extf %78 : vector<1x8xbf16> to vector<1x8xf32>
    %80 = vector.broadcast %79 : vector<1x8xf32> to vector<64x8xf32>
    %81 = arith.addf %76, %80 : vector<64x8xf32>
    %82 = vector.shape_cast %65 : vector<32x8xf32> to vector<4x8x8xf32>
    %83 = arith.truncf %82 : vector<4x8x8xf32> to vector<4x8x8xbf16>
    %84 = vector.shape_cast %73 : vector<64x8xf32> to vector<4x16x8xf32>
    %85 = arith.truncf %84 : vector<4x16x8xf32> to vector<4x16x8xbf16>
    %86 = vector.shape_cast %81 : vector<64x8xf32> to vector<4x16x8xf32>
    %87 = arith.truncf %86 : vector<4x16x8xf32> to vector<4x16x8xbf16>
    "tpu.trace_start"() <{level = 10 : i32, message = "bqd,bkd->bqk"}> : () -> ()
    %cst_56 = arith.constant dense<0.000000e+00> : vector<4x8x16xf32>
    %88 = tpu.matmul %83, %85, %cst_56 {dimension_numbers = #tpu.dot_dimension_numbers<[2], [2], [1], [1], [0, 0, 0, 1, 1, 1], [0], [0]>} : vector<4x8x8xbf16>, vector<4x16x8xbf16>, vector<4x8x16xf32> -> vector<4x8x16xf32>
    "tpu.trace_stop"() : () -> ()
    %cst_57 = arith.constant dense<0xFF800000> : vector<4x8xf32>
    %89 = vector.multi_reduction <maximumf>, %88, %cst_57 [2] : vector<4x8x16xf32> to vector<4x8xf32>
    %90 = vector.shape_cast %89 : vector<4x8xf32> to vector<4x8x1xf32>
    %91 = vector.broadcast %90 : vector<4x8x1xf32> to vector<4x8x16xf32>
    %92 = arith.subf %88, %91 : vector<4x8x16xf32>
    %93 = math.exp %92 : vector<4x8x16xf32>
    %cst_58 = arith.constant dense<0.000000e+00> : vector<4x8xf32>
    %94 = vector.multi_reduction <add>, %93, %cst_58 [2] : vector<4x8x16xf32> to vector<4x8xf32>
    %95 = vector.shape_cast %94 : vector<4x8xf32> to vector<4x8x1xf32>
    %96 = tpu.reciprocal %95 {approx = true} : vector<4x8x1xf32> -> vector<4x8x1xf32>
    %97 = vector.broadcast %96 : vector<4x8x1xf32> to vector<4x8x16xf32>
    %98 = arith.mulf %93, %97 : vector<4x8x16xf32>
    %99 = arith.truncf %98 : vector<4x8x16xf32> to vector<4x8x16xbf16>
    "tpu.trace_start"() <{level = 10 : i32, message = "bqk,bkd->bqd"}> : () -> ()
    %cst_59 = arith.constant dense<0.000000e+00> : vector<4x8x8xf32>
    %100 = tpu.matmul %99, %87, %cst_59 {dimension_numbers = #tpu.dot_dimension_numbers<[2], [1], [1], [2], [0, 0, 0, 1, 1, 2], [0], [0]>} : vector<4x8x16xbf16>, vector<4x16x8xbf16>, vector<4x8x8xf32> -> vector<4x8x8xf32>
    "tpu.trace_stop"() : () -> ()
    %101 = vector.shape_cast %100 : vector<4x8x8xf32> to vector<32x8xf32>
    %102 = arith.truncf %101 : vector<32x8xf32> to vector<32x8xbf16>
    %c1_60 = arith.constant 1 : index
    %c0_61 = arith.constant 0 : index
    %c0_62 = arith.constant 0 : index
    %103 = vector.load %arg9[%c1_60, %c0_61, %c0_62] : memref<4x8x32xbf16, #tpu.memory_space<vmem>>, vector<1x8x32xbf16>
    %104 = vector.shape_cast %103 : vector<1x8x32xbf16> to vector<8x32xbf16>
    %cst_63 = arith.constant dense<0.000000e+00> : vector<32x32xf32>
    %105 = tpu.matmul %102, %104, %cst_63 {dimension_numbers = #tpu.dot_dimension_numbers<[1], [0], [0], [1], [0, 0, 1, 1], [], []>} : vector<32x8xbf16>, vector<8x32xbf16>, vector<32x32xf32> -> vector<32x32xf32>
    %106 = arith.addf %55, %105 : vector<32x32xf32>
    %c2 = arith.constant 2 : index
    %c0_64 = arith.constant 0 : index
    %c0_65 = arith.constant 0 : index
    %107 = vector.load %arg3[%c2, %c0_64, %c0_65] : memref<4x32x8xbf16, #tpu.memory_space<vmem>>, vector<1x32x8xbf16>
    %108 = vector.shape_cast %107 : vector<1x32x8xbf16> to vector<32x8xbf16>
    %cst_66 = arith.constant dense<0.000000e+00> : vector<32x8xf32>
    %109 = tpu.matmul %1, %108, %cst_66 {dimension_numbers = #tpu.dot_dimension_numbers<[1], [0], [0], [1], [0, 0, 1, 1], [], []>} : vector<32x32xbf16>, vector<32x8xbf16>, vector<32x8xf32> -> vector<32x8xf32>
    %c2_67 = arith.constant 2 : index
    %c0_68 = arith.constant 0 : index
    %c0_69 = arith.constant 0 : index
    %110 = vector.load %arg4[%c2_67, %c0_68, %c0_69] : memref<4x1x8xbf16, #tpu.memory_space<vmem>>, vector<1x1x8xbf16>
    %111 = vector.shape_cast %110 : vector<1x1x8xbf16> to vector<1x8xbf16>
    %112 = arith.extf %111 : vector<1x8xbf16> to vector<1x8xf32>
    %113 = vector.broadcast %112 : vector<1x8xf32> to vector<32x8xf32>
    %114 = arith.addf %109, %113 : vector<32x8xf32>
    %cst_70 = arith.constant 0.353553385 : f32
    %115 = vector.broadcast %cst_70 : f32 to vector<32x8xf32>
    %116 = arith.mulf %114, %115 : vector<32x8xf32>
    %c2_71 = arith.constant 2 : index
    %c0_72 = arith.constant 0 : index
    %c0_73 = arith.constant 0 : index
    %117 = vector.load %arg5[%c2_71, %c0_72, %c0_73] : memref<4x32x8xbf16, #tpu.memory_space<vmem>>, vector<1x32x8xbf16>
    %118 = vector.shape_cast %117 : vector<1x32x8xbf16> to vector<32x8xbf16>
    %cst_74 = arith.constant dense<0.000000e+00> : vector<64x8xf32>
    %119 = tpu.matmul %3, %118, %cst_74 {dimension_numbers = #tpu.dot_dimension_numbers<[1], [0], [0], [1], [0, 0, 1, 1], [], []>} : vector<64x32xbf16>, vector<32x8xbf16>, vector<64x8xf32> -> vector<64x8xf32>
    %c2_75 = arith.constant 2 : index
    %c0_76 = arith.constant 0 : index
    %c0_77 = arith.constant 0 : index
    %120 = vector.load %arg6[%c2_75, %c0_76, %c0_77] : memref<4x1x8xbf16, #tpu.memory_space<vmem>>, vector<1x1x8xbf16>
    %121 = vector.shape_cast %120 : vector<1x1x8xbf16> to vector<1x8xbf16>
    %122 = arith.extf %121 : vector<1x8xbf16> to vector<1x8xf32>
    %123 = vector.broadcast %122 : vector<1x8xf32> to vector<64x8xf32>
    %124 = arith.addf %119, %123 : vector<64x8xf32>
    %c2_78 = arith.constant 2 : index
    %c0_79 = arith.constant 0 : index
    %c0_80 = arith.constant 0 : index
    %125 = vector.load %arg7[%c2_78, %c0_79, %c0_80] : memref<4x32x8xbf16, #tpu.memory_space<vmem>>, vector<1x32x8xbf16>
    %126 = vector.shape_cast %125 : vector<1x32x8xbf16> to vector<32x8xbf16>
    %cst_81 = arith.constant dense<0.000000e+00> : vector<64x8xf32>
    %127 = tpu.matmul %3, %126, %cst_81 {dimension_numbers = #tpu.dot_dimension_numbers<[1], [0], [0], [1], [0, 0, 1, 1], [], []>} : vector<64x32xbf16>, vector<32x8xbf16>, vector<64x8xf32> -> vector<64x8xf32>
    %c2_82 = arith.constant 2 : index
    %c0_83 = arith.constant 0 : index
    %c0_84 = arith.constant 0 : index
    %128 = vector.load %arg8[%c2_82, %c0_83, %c0_84] : memref<4x1x8xbf16, #tpu.memory_space<vmem>>, vector<1x1x8xbf16>
    %129 = vector.shape_cast %128 : vector<1x1x8xbf16> to vector<1x8xbf16>
    %130 = arith.extf %129 : vector<1x8xbf16> to vector<1x8xf32>
    %131 = vector.broadcast %130 : vector<1x8xf32> to vector<64x8xf32>
    %132 = arith.addf %127, %131 : vector<64x8xf32>
    %133 = vector.shape_cast %116 : vector<32x8xf32> to vector<4x8x8xf32>
    %134 = arith.truncf %133 : vector<4x8x8xf32> to vector<4x8x8xbf16>
    %135 = vector.shape_cast %124 : vector<64x8xf32> to vector<4x16x8xf32>
    %136 = arith.truncf %135 : vector<4x16x8xf32> to vector<4x16x8xbf16>
    %137 = vector.shape_cast %132 : vector<64x8xf32> to vector<4x16x8xf32>
    %138 = arith.truncf %137 : vector<4x16x8xf32> to vector<4x16x8xbf16>
    "tpu.trace_start"() <{level = 10 : i32, message = "bqd,bkd->bqk"}> : () -> ()
    %cst_85 = arith.constant dense<0.000000e+00> : vector<4x8x16xf32>
    %139 = tpu.matmul %134, %136, %cst_85 {dimension_numbers = #tpu.dot_dimension_numbers<[2], [2], [1], [1], [0, 0, 0, 1, 1, 1], [0], [0]>} : vector<4x8x8xbf16>, vector<4x16x8xbf16>, vector<4x8x16xf32> -> vector<4x8x16xf32>
    "tpu.trace_stop"() : () -> ()
    %cst_86 = arith.constant dense<0xFF800000> : vector<4x8xf32>
    %140 = vector.multi_reduction <maximumf>, %139, %cst_86 [2] : vector<4x8x16xf32> to vector<4x8xf32>
    %141 = vector.shape_cast %140 : vector<4x8xf32> to vector<4x8x1xf32>
    %142 = vector.broadcast %141 : vector<4x8x1xf32> to vector<4x8x16xf32>
    %143 = arith.subf %139, %142 : vector<4x8x16xf32>
    %144 = math.exp %143 : vector<4x8x16xf32>
    %cst_87 = arith.constant dense<0.000000e+00> : vector<4x8xf32>
    %145 = vector.multi_reduction <add>, %144, %cst_87 [2] : vector<4x8x16xf32> to vector<4x8xf32>
    %146 = vector.shape_cast %145 : vector<4x8xf32> to vector<4x8x1xf32>
    %147 = tpu.reciprocal %146 {approx = true} : vector<4x8x1xf32> -> vector<4x8x1xf32>
    %148 = vector.broadcast %147 : vector<4x8x1xf32> to vector<4x8x16xf32>
    %149 = arith.mulf %144, %148 : vector<4x8x16xf32>
    %150 = arith.truncf %149 : vector<4x8x16xf32> to vector<4x8x16xbf16>
    "tpu.trace_start"() <{level = 10 : i32, message = "bqk,bkd->bqd"}> : () -> ()
    %cst_88 = arith.constant dense<0.000000e+00> : vector<4x8x8xf32>
    %151 = tpu.matmul %150, %138, %cst_88 {dimension_numbers = #tpu.dot_dimension_numbers<[2], [1], [1], [2], [0, 0, 0, 1, 1, 2], [0], [0]>} : vector<4x8x16xbf16>, vector<4x16x8xbf16>, vector<4x8x8xf32> -> vector<4x8x8xf32>
    "tpu.trace_stop"() : () -> ()
    %152 = vector.shape_cast %151 : vector<4x8x8xf32> to vector<32x8xf32>
    %153 = arith.truncf %152 : vector<32x8xf32> to vector<32x8xbf16>
    %c2_89 = arith.constant 2 : index
    %c0_90 = arith.constant 0 : index
    %c0_91 = arith.constant 0 : index
    %154 = vector.load %arg9[%c2_89, %c0_90, %c0_91] : memref<4x8x32xbf16, #tpu.memory_space<vmem>>, vector<1x8x32xbf16>
    %155 = vector.shape_cast %154 : vector<1x8x32xbf16> to vector<8x32xbf16>
    %cst_92 = arith.constant dense<0.000000e+00> : vector<32x32xf32>
    %156 = tpu.matmul %153, %155, %cst_92 {dimension_numbers = #tpu.dot_dimension_numbers<[1], [0], [0], [1], [0, 0, 1, 1], [], []>} : vector<32x8xbf16>, vector<8x32xbf16>, vector<32x32xf32> -> vector<32x32xf32>
    %157 = arith.addf %106, %156 : vector<32x32xf32>
    %c3 = arith.constant 3 : index
    %c0_93 = arith.constant 0 : index
    %c0_94 = arith.constant 0 : index
    %158 = vector.load %arg3[%c3, %c0_93, %c0_94] : memref<4x32x8xbf16, #tpu.memory_space<vmem>>, vector<1x32x8xbf16>
    %159 = vector.shape_cast %158 : vector<1x32x8xbf16> to vector<32x8xbf16>
    %cst_95 = arith.constant dense<0.000000e+00> : vector<32x8xf32>
    %160 = tpu.matmul %1, %159, %cst_95 {dimension_numbers = #tpu.dot_dimension_numbers<[1], [0], [0], [1], [0, 0, 1, 1], [], []>} : vector<32x32xbf16>, vector<32x8xbf16>, vector<32x8xf32> -> vector<32x8xf32>
    %c3_96 = arith.constant 3 : index
    %c0_97 = arith.constant 0 : index
    %c0_98 = arith.constant 0 : index
    %161 = vector.load %arg4[%c3_96, %c0_97, %c0_98] : memref<4x1x8xbf16, #tpu.memory_space<vmem>>, vector<1x1x8xbf16>
    %162 = vector.shape_cast %161 : vector<1x1x8xbf16> to vector<1x8xbf16>
    %163 = arith.extf %162 : vector<1x8xbf16> to vector<1x8xf32>
    %164 = vector.broadcast %163 : vector<1x8xf32> to vector<32x8xf32>
    %165 = arith.addf %160, %164 : vector<32x8xf32>
    %cst_99 = arith.constant 0.353553385 : f32
    %166 = vector.broadcast %cst_99 : f32 to vector<32x8xf32>
    %167 = arith.mulf %165, %166 : vector<32x8xf32>
    %c3_100 = arith.constant 3 : index
    %c0_101 = arith.constant 0 : index
    %c0_102 = arith.constant 0 : index
    %168 = vector.load %arg5[%c3_100, %c0_101, %c0_102] : memref<4x32x8xbf16, #tpu.memory_space<vmem>>, vector<1x32x8xbf16>
    %169 = vector.shape_cast %168 : vector<1x32x8xbf16> to vector<32x8xbf16>
    %cst_103 = arith.constant dense<0.000000e+00> : vector<64x8xf32>
    %170 = tpu.matmul %3, %169, %cst_103 {dimension_numbers = #tpu.dot_dimension_numbers<[1], [0], [0], [1], [0, 0, 1, 1], [], []>} : vector<64x32xbf16>, vector<32x8xbf16>, vector<64x8xf32> -> vector<64x8xf32>
    %c3_104 = arith.constant 3 : index
    %c0_105 = arith.constant 0 : index
    %c0_106 = arith.constant 0 : index
    %171 = vector.load %arg6[%c3_104, %c0_105, %c0_106] : memref<4x1x8xbf16, #tpu.memory_space<vmem>>, vector<1x1x8xbf16>
    %172 = vector.shape_cast %171 : vector<1x1x8xbf16> to vector<1x8xbf16>
    %173 = arith.extf %172 : vector<1x8xbf16> to vector<1x8xf32>
    %174 = vector.broadcast %173 : vector<1x8xf32> to vector<64x8xf32>
    %175 = arith.addf %170, %174 : vector<64x8xf32>
    %c3_107 = arith.constant 3 : index
    %c0_108 = arith.constant 0 : index
    %c0_109 = arith.constant 0 : index
    %176 = vector.load %arg7[%c3_107, %c0_108, %c0_109] : memref<4x32x8xbf16, #tpu.memory_space<vmem>>, vector<1x32x8xbf16>
    %177 = vector.shape_cast %176 : vector<1x32x8xbf16> to vector<32x8xbf16>
    %cst_110 = arith.constant dense<0.000000e+00> : vector<64x8xf32>
    %178 = tpu.matmul %3, %177, %cst_110 {dimension_numbers = #tpu.dot_dimension_numbers<[1], [0], [0], [1], [0, 0, 1, 1], [], []>} : vector<64x32xbf16>, vector<32x8xbf16>, vector<64x8xf32> -> vector<64x8xf32>
    %c3_111 = arith.constant 3 : index
    %c0_112 = arith.constant 0 : index
    %c0_113 = arith.constant 0 : index
    %179 = vector.load %arg8[%c3_111, %c0_112, %c0_113] : memref<4x1x8xbf16, #tpu.memory_space<vmem>>, vector<1x1x8xbf16>
    %180 = vector.shape_cast %179 : vector<1x1x8xbf16> to vector<1x8xbf16>
    %181 = arith.extf %180 : vector<1x8xbf16> to vector<1x8xf32>
    %182 = vector.broadcast %181 : vector<1x8xf32> to vector<64x8xf32>
    %183 = arith.addf %178, %182 : vector<64x8xf32>
    %184 = vector.shape_cast %167 : vector<32x8xf32> to vector<4x8x8xf32>
    %185 = arith.truncf %184 : vector<4x8x8xf32> to vector<4x8x8xbf16>
    %186 = vector.shape_cast %175 : vector<64x8xf32> to vector<4x16x8xf32>
    %187 = arith.truncf %186 : vector<4x16x8xf32> to vector<4x16x8xbf16>
    %188 = vector.shape_cast %183 : vector<64x8xf32> to vector<4x16x8xf32>
    %189 = arith.truncf %188 : vector<4x16x8xf32> to vector<4x16x8xbf16>
    "tpu.trace_start"() <{level = 10 : i32, message = "bqd,bkd->bqk"}> : () -> ()
    %cst_114 = arith.constant dense<0.000000e+00> : vector<4x8x16xf32>
    %190 = tpu.matmul %185, %187, %cst_114 {dimension_numbers = #tpu.dot_dimension_numbers<[2], [2], [1], [1], [0, 0, 0, 1, 1, 1], [0], [0]>} : vector<4x8x8xbf16>, vector<4x16x8xbf16>, vector<4x8x16xf32> -> vector<4x8x16xf32>
    "tpu.trace_stop"() : () -> ()
    %cst_115 = arith.constant dense<0xFF800000> : vector<4x8xf32>
    %191 = vector.multi_reduction <maximumf>, %190, %cst_115 [2] : vector<4x8x16xf32> to vector<4x8xf32>
    %192 = vector.shape_cast %191 : vector<4x8xf32> to vector<4x8x1xf32>
    %193 = vector.broadcast %192 : vector<4x8x1xf32> to vector<4x8x16xf32>
    %194 = arith.subf %190, %193 : vector<4x8x16xf32>
    %195 = math.exp %194 : vector<4x8x16xf32>
    %cst_116 = arith.constant dense<0.000000e+00> : vector<4x8xf32>
    %196 = vector.multi_reduction <add>, %195, %cst_116 [2] : vector<4x8x16xf32> to vector<4x8xf32>
    %197 = vector.shape_cast %196 : vector<4x8xf32> to vector<4x8x1xf32>
    %198 = tpu.reciprocal %197 {approx = true} : vector<4x8x1xf32> -> vector<4x8x1xf32>
    %199 = vector.broadcast %198 : vector<4x8x1xf32> to vector<4x8x16xf32>
    %200 = arith.mulf %195, %199 : vector<4x8x16xf32>
    %201 = arith.truncf %200 : vector<4x8x16xf32> to vector<4x8x16xbf16>
    "tpu.trace_start"() <{level = 10 : i32, message = "bqk,bkd->bqd"}> : () -> ()
    %cst_117 = arith.constant dense<0.000000e+00> : vector<4x8x8xf32>
    %202 = tpu.matmul %201, %189, %cst_117 {dimension_numbers = #tpu.dot_dimension_numbers<[2], [1], [1], [2], [0, 0, 0, 1, 1, 2], [0], [0]>} : vector<4x8x16xbf16>, vector<4x16x8xbf16>, vector<4x8x8xf32> -> vector<4x8x8xf32>
    "tpu.trace_stop"() : () -> ()
    %203 = vector.shape_cast %202 : vector<4x8x8xf32> to vector<32x8xf32>
    %204 = arith.truncf %203 : vector<32x8xf32> to vector<32x8xbf16>
    %c3_118 = arith.constant 3 : index
    %c0_119 = arith.constant 0 : index
    %c0_120 = arith.constant 0 : index
    %205 = vector.load %arg9[%c3_118, %c0_119, %c0_120] : memref<4x8x32xbf16, #tpu.memory_space<vmem>>, vector<1x8x32xbf16>
    %206 = vector.shape_cast %205 : vector<1x8x32xbf16> to vector<8x32xbf16>
    %cst_121 = arith.constant dense<0.000000e+00> : vector<32x32xf32>
    %207 = tpu.matmul %204, %206, %cst_121 {dimension_numbers = #tpu.dot_dimension_numbers<[1], [0], [0], [1], [0, 0, 1, 1], [], []>} : vector<32x8xbf16>, vector<8x32xbf16>, vector<32x32xf32> -> vector<32x32xf32>
    %208 = arith.addf %157, %207 : vector<32x32xf32>
    %209 = vector.shape_cast %208 : vector<32x32xf32> to vector<4x8x32xf32>
    %c0_122 = arith.constant 0 : index
    %c0_123 = arith.constant 0 : index
    %c0_124 = arith.constant 0 : index
    %210 = vector.load %arg10[%c0_122, %c0_123, %c0_124] : memref<4x8x32xf32, #tpu.memory_space<vmem>>, vector<4x8x32xf32>
    tpu.vector_store %arg10[%c0_122, %c0_123, %c0_124], %209 {strides = array<i32>} : memref<4x8x32xf32, #tpu.memory_space<vmem>>, vector<4x8x32xf32>,
    return
  }
  func.func @transform_0(%arg0: i32) -> (i32, i32, i32) {
    %c0_i32 = arith.constant 0 : i32
    %c0_i32_0 = arith.constant 0 : i32
    %c0_i32_1 = arith.constant 0 : i32
    return %arg0, %c0_i32, %c0_i32_0 : i32, i32, i32
  }
  func.func @transform_1(%arg0: i32) -> (i32, i32, i32) {
    %c0_i32 = arith.constant 0 : i32
    %c0_i32_0 = arith.constant 0 : i32
    %c0_i32_1 = arith.constant 0 : i32
    return %arg0, %c0_i32, %c0_i32_0 : i32, i32, i32
  }
  func.func @transform_2(%arg0: i32) -> (i32, i32, i32) {
    %c0_i32 = arith.constant 0 : i32
    %c0_i32_0 = arith.constant 0 : i32
    %c0_i32_1 = arith.constant 0 : i32
    %c0_i32_2 = arith.constant 0 : i32
    return %c0_i32, %c0_i32_0, %c0_i32_1 : i32, i32, i32
  }
  func.func @transform_3(%arg0: i32) -> (i32, i32, i32) {
    %c0_i32 = arith.constant 0 : i32
    %c0_i32_0 = arith.constant 0 : i32
    %c0_i32_1 = arith.constant 0 : i32
    %c0_i32_2 = arith.constant 0 : i32
    return %c0_i32, %c0_i32_0, %c0_i32_1 : i32, i32, i32
  }
  func.func @transform_4(%arg0: i32) -> (i32, i32, i32) {
    %c0_i32 = arith.constant 0 : i32
    %c0_i32_0 = arith.constant 0 : i32
    %c0_i32_1 = arith.constant 0 : i32
    %c0_i32_2 = arith.constant 0 : i32
    return %c0_i32, %c0_i32_0, %c0_i32_1 : i32, i32, i32
  }
  func.func @transform_5(%arg0: i32) -> (i32, i32, i32) {
    %c0_i32 = arith.constant 0 : i32
    %c0_i32_0 = arith.constant 0 : i32
    %c0_i32_1 = arith.constant 0 : i32
    %c0_i32_2 = arith.constant 0 : i32
    return %c0_i32, %c0_i32_0, %c0_i32_1 : i32, i32, i32
  }
  func.func @transform_6(%arg0: i32) -> (i32, i32, i32) {
    %c0_i32 = arith.constant 0 : i32
    %c0_i32_0 = arith.constant 0 : i32
    %c0_i32_1 = arith.constant 0 : i32
    %c0_i32_2 = arith.constant 0 : i32
    return %c0_i32, %c0_i32_0, %c0_i32_1 : i32, i32, i32
  }
  func.func @transform_7(%arg0: i32) -> (i32, i32, i32) {
    %c0_i32 = arith.constant 0 : i32
    %c0_i32_0 = arith.constant 0 : i32
    %c0_i32_1 = arith.constant 0 : i32
    %c0_i32_2 = arith.constant 0 : i32
    return %c0_i32, %c0_i32_0, %c0_i32_1 : i32, i32, i32
  }
  func.func @transform_8(%arg0: i32) -> (i32, i32, i32) {
    %c0_i32 = arith.constant 0 : i32
    %c0_i32_0 = arith.constant 0 : i32
    %c0_i32_1 = arith.constant 0 : i32
    %c0_i32_2 = arith.constant 0 : i32
    return %c0_i32, %c0_i32_0, %c0_i32_1 : i32, i32, i32
  }
  func.func @transform_9(%arg0: i32) -> (i32, i32, i32) {
    %c0_i32 = arith.constant 0 : i32
    %c0_i32_0 = arith.constant 0 : i32
    %c0_i32_1 = arith.constant 0 : i32
    return %arg0, %c0_i32, %c0_i32_0 : i32, i32, i32
  }
}

</mosaic_0001>

<bundles_post_ra>
// kernel: tpu_custom_call.1
= control target key start
LH: loop header
LB: loop body
LE: loop exit
PB: predicated region body
PF: predicated region fallthrough
CT: control target
= control target key end

     0   :  { %14 = vsyncpa [#allocation3], 0  ;;  %s5037_s0 = inlined_call_operand.vmem [shape: bf16[8,8,32], index: 0, kind: input, shape index: {}]   ;;  %s5038_s1 = inlined_call_operand.vmem [shape: bf16[8,16,32], index: 1, kind: input, shape index: {}]   ;;  %s5039_s2 = inlined_call_operand.vmem [shape: bf16[4,32,8], index: 2, kind: input, shape index: {}]   ;;  %s5040_s3 = inlined_call_operand.vmem [shape: bf16[4,1,8], index: 3, kind: input, shape index: {}]   ;;  %s5041_s4 = inlined_call_operand.vmem [shape: bf16[4,32,8], index: 4, kind: input, shape index: {}]   ;;  %s5042_s5 = inlined_call_operand.vmem [shape: bf16[4,1,8], index: 5, kind: input, shape index: {}]   ;;  %s5043_s6 = inlined_call_operand.vmem [shape: bf16[4,32,8], index: 6, kind: input, shape index: {}]   ;;  %s5044_s7 = inlined_call_operand.vmem [shape: bf16[4,1,8], index: 7, kind: input, shape index: {}]   ;;  %s5045_s8 = inlined_call_operand.vmem [shape: bf16[4,8,32], index: 8, kind: input, shape index: {}]   ;;  %s5046_s9 = inlined_call_operand.hbm [shape: f32[8,8,32], index: 9, kind: output, shape index: {}]  }
   0x1   :  { %16 = vsyncpa [#allocation3 + $0x1], 0  ;;  %s4372_s30 = smov 0   ;;  %s4374_s10 = smov 0  }
   0x2   :  { %s4376_s11 = smov 0   ;;  %s4378_s12 = smov 0  }
   0x3 LB: > { %s4393_s13 = sadd.s32 4294967295, %s4315_s12   ;;  %s3449_s14 = sadd.s32 4294967294, %s4315_s12   ;;  %s4315_s12 = sphi %s4378_s12, %s5052_s12   ;;  %s4311_s11 = sphi %s4376_s11, %s5051_s11   ;;  %s4307_s10 = sphi %s4374_s10, %s5050_s10   ;;  %s4303_s30 = sphi %s4372_s30, %s5049_s30  }
   0x4   : > { %s4397_s15 = sadd.s32 1, %s4315_s12   ;;  %s228_s16 = sadd.s32 1, %s4311_s11 }
   0x5   : > { %s225_s17 = ssub.s32 %s4315_s12, %s4397_s15  ;;  %p238_p0 = scmp.ne.s32.totalorder %s4311_s11, %s4307_s10 }
   0x6   : > { %p226_p1 = scmp.eq.s32.totalorder %s225_s17, 0  ;;  %p239_p2 = scmp.eq.s32.totalorder %s4393_s13, 1 }
   0x7   : > { %p244_p3 = scmp.ne.s32.totalorder %s4307_s10, %s4303_s30  ;;  %p245_p4 = scmp.eq.s32.totalorder %s3449_s14, 1 }
   0x8   : > { %s4408_s18 = scalar_select %p226_p1, %s4311_s11, %s228_s16  }
   0x9   : > { %p4410_p5 = por %p239_p2, %p238_p0  ;;  %p4414_p6 = por %p245_p4, %p244_p3 }
   0xa   : > { %p3452_p7 = scmp.ge.s32.totalorder %s4315_s12, 1  ;;  %p303_p8 = scmp.lt.s32.totalorder %s4315_s12, 3 }
   0xc   : > { %p304_p9 = pnand %p3452_p7, %p303_p8 }
   0xd   : > { %s3454_s23 = sshll.u32 (!%p304_p9), %s4393_s13, 2  ;;  %s342_s24 = sand.u32 (!%p304_p9), 1, %s4307_s10  }
   0xe   : > { %307 = sbr.rel (%p304_p9) target bundleno = 3749 (0xea5), region = 56  ;;  %p346_p10 = scmp.lt.s32.totalorder (!%p304_p9), %s3454_s23, 7 }
   0xf   : > { %s3453_s26 = sshll.u32 (!%p304_p9), %s342_s24, 5 }
  0x10   : > { %s344_s27 = scalar_lea.vmem (!%p304_p9), [#allocation2], %s3453_s26 }
  0x13   : > { %v4155_v0 = vld [vmem:[%s5039_s2 + $0x8] sm:$0xff]   ;;  %v4157_v2 = vld [vmem:[%s5039_s2] sm:$0xff]   ;;  %s5054_s23 = smov (!%p346_p10, %s3454_s23), 7  ;;  %vm404_vm0 = vcmask 261120   ;;  %v4317_v12 = vmov 0.0   ;;  %vm4318_vm1 = vmmov 0   ;;  %v378_v13 = vlaneseq }
  0x14   : > { %v4156_v1 = vld [vmem:[%s5041_s4 + $0x8] sm:$0xff]   ;;  %3764 = vmatprep.subr.bf16.mxu0 %v4155_v0  ;;  %v4158_v3 = vld [vmem:[%s5041_s4] sm:$0xff]   ;;  %s3455_s17 = sshll.u32 %s5054_s23, 2  ;;  %s3622_s21 = sshll.u32 %s5054_s23, 3  ;;  %vm682_vm2 = vcmask 64512   ;;  %vm867_vm3 = vcmask 130048  }
  0x15   : > { %3772 = vmatprep.subr.bf16.mxu1 %v4156_v1  ;;  %3765 = vmatpush3.bf16.msra.mxu0 %v4155_v0  ;;  %v4165_v4 = vld [vmem:[%s5043_s6 + $0x8] sm:$0xff]   ;;  %s4439_s25 = scalar_lea.vmem %s5037_s0, %s3455_s17  ;;  %s4444_s28 = scalar_lea.vmem %s5038_s1, %s3622_s21  ;;  %v4166_v6 = vld [vmem:[%s5043_s6] sm:$0xff]   ;;  %v379_v14 = vshrl.u32 %v378_v13, 7  ;;  %vm1772_vm4 = vcmask 1043456  }
  0x16   : > { %3773 = vmatpush3.bf16.msra.mxu1 %v4156_v1  ;;  %3766 = vmatprep.subr.bf16.mxu0 %v4157_v2  ;;  %v4447_v5 = vld [vmem:[%s4439_s25] sm:$0xff]   ;;  %v4458_v8 = vld [vmem:[%s4439_s25 + $0x8] sm:$0xff]   ;;  %v4468_v10 = vld [vmem:[%s4444_s28 + $0x10] sm:$0xff]   ;;  %s3375_s23 = sshll.u32 %s344_s27, 4  ;;  %s4319_s21 = smov [#allocation2]   ;;  %s4987_s23 = int_to_ptr.vmem [resolvable:$true] %s3375_s23 }
  0x17   : > { %3774 = vmatprep.subr.bf16.mxu1 %v4158_v3  ;;  %v4453_v7 = vld [vmem:[%s4444_s28] sm:$0xff]   ;;  %3768 = vmatprep.mubr.msk.bf16.mxu0 %vm404_vm0, %v4447_v5  ;;  %v4463_v9 = vld [vmem:[%s4444_s28 + $0x8] sm:$0xff]   ;;  %v4475_v11 = vld [vmem:[%s4444_s28 + $0x18] sm:$0xff]   ;;  %v4496_v16 = vsub.s32 0, %v379_v14  ;;  %s4255_s17 = scalar_lea.vmem %s4987_s23, 512 }
  0x18   : > { %3776 = vmatprep.mubr.msk.bf16.mxu1 %vm404_vm0, %v4453_v7  ;;  %v468_v15 = vld [vmem:[%s5042_s5] sm:$0x1]  ;;  %p4256_p11 = scmp.ne.s32.totalorder %s4987_s23, %s4255_s17 }
  0x19   : > { %3767 = vmatpush3.bf16.msra.mxu0 %v4157_v2  ;;  %v469_v17 = vunpack.c.l.bf16 %v468_v15  ;;  %v376_v18 = vld [vmem:[%s5040_s3] sm:$0x1] }
  0x1a   : > { %3775 = vmatpush3.bf16.msra.mxu1 %v4158_v3  ;;  %3784 = vmatprep.subr.bf16.mxu0 %v4165_v4  ;;  %v377_v21 = vunpack.c.l.bf16 %v376_v18  ;;  %v587_v36 = vld [vmem:[%s5044_s7] sm:$0x1]  ;;  %p4257_p12 = pnand %p4256_p11, %p4410_p5 }
  0x1b   : > { %3796 = vmatprep.subr.bf16.mxu1 %v4317_v12  ;;  %v473_v22 = vrot.slane %v469_v17, %v4496_v16  ;;  %v588_v44 = vunpack.c.l.bf16 %v587_v36 }
  0x1c   : > { %3769 = vmatmul.mubr.msk.bf16.vlgmr.msra.gmra.mxu0 %vm404_vm0, %v4458_v8  ;;  %v381_v27 = vrot.slane %v377_v21, %v4496_v16  ;;  %p4258_p13 = pneg %p4257_p12 }
  0x1d   : > { %3777 = vmatmul.mubr.msk.bf16.vlgmr.msra.gmra.mxu1 %vm404_vm0, %v4463_v9  ;;  %3785 = vmatpush3.bf16.msra.mxu0 %v4165_v4  ;;  %v592_v55 = vrot.slane %v588_v44, %v4496_v16 }
  0x1e   : > { %3780 = vmatprep.mubr.msk.bf16.mxu1 %vm404_vm0, %v4468_v10  ;;  %3786 = vmatprep.subr.bf16.mxu0 %v4166_v6 }
  0x1f   : > { %3788 = vmatprep.mubr.msk.bf16.mxu0 %vm404_vm0, %v4453_v7 }
  0x21   : > { %3787 = vmatpush3.bf16.msra.mxu0 %v4166_v6 }
  0x22   : > { %3802 = vmatprep.subr.bf16.mxu0 %v4317_v12 }
  0x24   : > { %3789 = vmatmul.mubr.msk.bf16.vlgmr.msra.gmra.mxu0 %vm404_vm0, %v4463_v9 }
  0x25   : > { %3781 = vmatmul.mubr.msk.bf16.gmra.mxu1 %vm404_vm0, %v4475_v11  ;;  %3792 = vmatprep.mubr.msk.bf16.mxu0 %vm404_vm0, %v4468_v10 }
  0x26   : > { %3798 = vmatprep.mubr.msk.bf16.mxu1 %vm4318_vm1, %v4317_v12 }
  0x2c   : > { %3793 = vmatmul.mubr.msk.bf16.gmra.mxu0 %vm404_vm0, %v4475_v11 }
  0x2d   : > { %3804 = vmatprep.mubr.msk.bf16.mxu0 %vm4318_vm1, %v4317_v12 }
  0xdc   : > { %v3770_v19 = vpop.f32.mrf.mxu0 }
  0xdd   : > { %v3778_v20 = vpop.f32.mrf.mxu1  ;;  %v454_v62 = vadd.f32 %v3770_v19, %v381_v27 }
  0xde   : > { %v445_v23 = vpop.f32.mrf.mxu0  ;;  %v561_v28 = vadd.f32 %v3778_v20, %v473_v22 }
  0xdf   : > { %v552_v24 = vpop.f32.mrf.mxu1  ;;  %v446_v39 = vadd.f32 %v445_v23, %v381_v27  ;;  %v462_v20 = vmul.f32 0.35355338, %v454_v62 }
  0xe0   : > { %v3771_v25 = vpop.f32.mrf.mxu0  ;;  %v553_v32 = vadd.f32 %v552_v24, %v473_v22 }
  0xe1   : > { %v3779_v26 = vpop.f32.mrf.mxu1  ;;  %v460_v49 = vmul.f32 0.35355338, %v446_v39  ;;  %v457_v53 = vadd.f32 %v3771_v25, %v381_v27 }
  0xe2   : > { %v564_v29 = vadd.f32 %v3779_v26, %v473_v22  ;;  %v448_v30 = vpop.f32.mrf.mxu0 }
  0xe3   : > { %v555_v31 = vpop.f32.mrf.mxu1  ;;  %v449_v34 = vadd.f32 %v448_v30, %v381_v27  ;;  %v670_v63 = vpack.c.bf16 %v460_v49, %v460_v49  ;;  %v463_v13 = vmul.f32 0.35355338, %v457_v53 }
  0xe4   : > { %v675_v33 = vpack.c.bf16 %v564_v29, %v561_v28  ;;  %v556_v35 = vadd.f32 %v555_v31, %v473_v22  ;;  %v3790_v37 = vpop.f32.mrf.mxu0  ;;  %v672_v28 = vpack.c.bf16 %v462_v20, %v462_v20 }
  0xe5   : > { %v3782_v38 = vpop.f32.mrf.mxu1  ;;  %v461_v45 = vmul.f32 0.35355338, %v449_v34  ;;  %v648_v3 = vadd.f32 %v3790_v37, %v592_v55  ;;  %v673_v25 = vpack.c.bf16 %v463_v13, %v463_v13 }
  0xe6   : > { %v674_v40 = vpack.c.bf16 %v556_v35, %v553_v32  ;;  %v733_v41 = vsel %vm682_vm2, %v675_v33, 0  ;;  %v639_v42 = vpop.f32.mrf.mxu0  ;;  %v577_v50 = vadd.f32 %v3782_v38, %v473_v22 }
  0xe7   : > { %v568_v43 = vpop.f32.mrf.mxu1  ;;  %3803 = vmatpush3.bf16.xpose.msra.mxu0 %v733_v41  ;;  %v671_v56 = vpack.c.bf16 %v461_v45, %v461_v45  ;;  %v640_v17 = vadd.f32 %v639_v42, %v592_v55 }
  0xe8   : > { %v687_v46 = vsel %vm682_vm2, %v674_v40, 0  ;;  %3814 = vmatprep.subr.bf16.mxu0 %v4317_v12  ;;  %v3791_v47 = vpop.f32.mrf.mxu0  ;;  %v569_v57 = vadd.f32 %v568_v43, %v473_v22 }
  0xe9   : > { %v3783_v48 = vpop.f32.mrf.mxu1  ;;  %3797 = vmatpush3.bf16.xpose.msra.mxu1 %v687_v46  ;;  %v651_v4 = vadd.f32 %v3791_v47, %v592_v55 }
  0xea   : > { %v580_v51 = vadd.f32 %v3783_v48, %v473_v22  ;;  %3808 = vmatprep.subr.bf16.mxu1 %v4317_v12  ;;  %v642_v52 = vpop.f32.mrf.mxu0 }
  0xeb   : > { %v571_v54 = vpop.f32.mrf.mxu1  ;;  %v643_v18 = vadd.f32 %v642_v52, %v592_v55 }
  0xec   : > { %v677_v58 = vpack.c.bf16 %v580_v51, %v577_v50  ;;  %v572_v59 = vadd.f32 %v571_v54, %v473_v22  ;;  %v3794_v60 = vpop.f32.mrf.mxu0  ;;  %v679_v22 = vpack.c.bf16 %v651_v4, %v648_v3 }
  0xed   : > { %v4511_v61 = vadd.f32 %v3794_v60, %v592_v55  ;;  %v678_v26 = vpack.c.bf16 %v643_v18, %v640_v17 }
  0xee   : > { %v676_v0 = vpack.c.bf16 %v572_v59, %v569_v57  ;;  %3805 = vmatmul.mubr.msk.bf16.vlgmr.msra.gmra.mxu0 %vm682_vm2, %v671_v56  ;;  %v825_v1 = vsel %vm682_vm2, %v677_v58, 0  ;;  %v655_v2 = vpop.f32.mrf.mxu0 }
  0xef   : > { %3815 = vmatpush3.bf16.xpose.msra.mxu0 %v825_v1  ;;  %3816 = vmatprep.mubr.msk.bf16.mxu0 %vm4318_vm1, %v4317_v12  ;;  %v4517_v6 = vadd.f32 %v655_v2, %v592_v55 }
  0xf0   : > { %3799 = vmatmul.mubr.msk.bf16.vlgmr.msra.gmra.mxu1 %vm682_vm2, %v670_v63  ;;  %v779_v14 = vsel %vm682_vm2, %v676_v0, 0  ;;  %3826 = vmatprep.subr.bf16.mxu0 %v4317_v12  ;;  %v3795_v15 = vpop.f32.mrf.mxu0 }
  0xf1   : > { %3809 = vmatpush3.bf16.xpose.msra.mxu1 %v779_v14  ;;  %3810 = vmatprep.mubr.msk.bf16.mxu1 %vm4318_vm1, %v4317_v12  ;;  %v4524_v19 = vadd.f32 %v3795_v15, %v592_v55 }
  0xf2   : > { %3820 = vmatprep.subr.bf16.mxu1 %v4317_v12  ;;  %v658_v21 = vpop.f32.mrf.mxu0 }
  0xf3   : > { %v681_v23 = vpack.c.bf16 %v4524_v19, %v4511_v61  ;;  %v4529_v24 = vadd.f32 %v658_v21, %v592_v55  ;;  %v4169_v19 = vld [vmem:[%s5041_s4 + $0x10] sm:$0xff]  }
  0xf5   : > { %v680_v27 = vpack.c.bf16 %v4529_v24, %v4517_v6  ;;  %v4170_v6 = vld [vmem:[%s5039_s2 + $0x10] sm:$0xff]  }
  0xf6   : > { %3817 = vmatmul.mubr.msk.bf16.vlgmr.msra.gmra.mxu0 %vm682_vm2, %v673_v25  ;;  %v4167_v25 = vld [vmem:[%s5041_s4 + $0x18] sm:$0xff]   ;;  %v4172_v24 = vld [vmem:[%s5043_s6 + $0x10] sm:$0xff]  }
  0xf7   : > { %3827 = vmatpush3.bf16.msra.mxu0 %v679_v22  ;;  %3828 = vmatprep.mubr.msk.bf16.mxu0 %vm4318_vm1, %v4317_v12 }
  0xf8   : > { %3811 = vmatmul.mubr.msk.bf16.vlgmr.msra.gmra.mxu1 %vm682_vm2, %v672_v28  ;;  %3838 = vmatprep.subr.bf16.mxu0 %v4317_v12 }
  0xf9   : > { %3821 = vmatpush3.bf16.msra.mxu1 %v678_v26  ;;  %3822 = vmatprep.mubr.msk.bf16.mxu1 %vm4318_vm1, %v4317_v12 }
  0xfa   : > { %3832 = vmatprep.subr.bf16.mxu1 %v4317_v12 }
 0x1ae   : > { %v769_v29 = vpop.f32.mrf.mxu0 }
 0x1af   : > { %v871_v30 = vsel %vm867_vm3, %v769_v29, -inf }
 0x1b0   : > { %872 = vmax.xlane.f32.xlu0 %v871_v30  ;;  %v723_v31 = vpop.f32.mrf.mxu1  ;;  %v3806_v32 = vpop.f32.mrf.mxu0  ;;  %v4168_v30 = vld [vmem:[%s5039_s2 + $0x18] sm:$0xff]  }
 0x1b1   : > { %v868_v35 = vsel %vm867_vm3, %v723_v31, -inf }
 0x1b2   : > { %v3800_v33 = vpop.f32.mrf.mxu1  ;;  %v772_v34 = vpop.f32.mrf.mxu0 }
 0x1b4   : > { %v3807_v36 = vpop.f32.mrf.mxu0  ;;  %869 = vmax.xlane.f32.xlu0 %v868_v35  ;;  %v726_v37 = vpop.f32.mrf.mxu1 }
 0x1b6   : > { %v3801_v38 = vpop.f32.mrf.mxu1  ;;  %v861_v39 = vpop.f32.mrf.mxu0 }
 0x1b7   : > { %v877_v40 = vsel %vm867_vm3, %v861_v39, -inf }
 0x1b8   : > { %878 = vmax.xlane.f32.xlu1 %v877_v40  ;;  %v815_v41 = vpop.f32.mrf.mxu1  ;;  %v3818_v42 = vpop.f32.mrf.mxu0 }
 0x1b9   : > { %v874_v45 = vsel %vm867_vm3, %v815_v41, -inf }
 0x1ba   : > { %v3812_v43 = vpop.f32.mrf.mxu1  ;;  %v864_v44 = vpop.f32.mrf.mxu0 }
 0x1bc   : > { %v3819_v46 = vpop.f32.mrf.mxu0  ;;  %875 = vmax.xlane.f32.xlu1 %v874_v45  ;;  %v818_v47 = vpop.f32.mrf.mxu1  ;;  %v3502_v45 = vld [vmem:[%s5042_s5 + $0x1] sm:$0x1] }
 0x1be   : > { %v3813_v48 = vpop.f32.mrf.mxu1 }
 0x239   : > { %v873_v49 = vpop.xlane.xlu0 %872 }
 0x23a   : > { %v881_v50 = vsub.f32 %v769_v29, %v873_v49  ;;  %v1175_v49 = vunpack.c.l.bf16 %v3502_v45  ;;  %v3513_v45 = vld [vmem:[%s5044_s7 + $0x1] sm:$0x1] }
 0x23c   : > { %v886_v51 = vmul.f32 1.442695, %v881_v50 }
 0x23d   : > { %v870_v52 = vpop.xlane.xlu0 %869 }
 0x23e   : > { %4185 = vpow2.f32 %v886_v51  ;;  %v880_v53 = vsub.f32 %v723_v31, %v870_v52  ;;  %v3493_v52 = vld [vmem:[%s5040_s3 + $0x1] sm:$0x1] }
 0x240   : > { %v884_v54 = vmul.f32 1.442695, %v880_v53 }
 0x241   : > { %v879_v55 = vpop.xlane.xlu1 %878 }
 0x242   : > { %4187 = vpow2.f32 %v884_v54  ;;  %v883_v56 = vsub.f32 %v861_v39, %v879_v55  ;;  %v1179_v55 = vrot.slane %v1175_v49, %v4496_v16 }
 0x244   : > { %v890_v57 = vmul.f32 1.442695, %v883_v56 }
 0x245   : > { %v876_v58 = vpop.xlane.xlu1 %875 }
 0x246   : > { %4189 = vpow2.f32 %v890_v57  ;;  %v882_v59 = vsub.f32 %v815_v41, %v876_v58  ;;  %v1098_v58 = vunpack.c.l.bf16 %v3493_v52 }
 0x248   : > { %v888_v60 = vmul.f32 1.442695, %v882_v59 }
 0x24a   : > { %4191 = vpow2.f32 %v888_v60 }
 0x24b   : > { %v4186_v62 = vpop.eup %4185 }
 0x24c   : > { %v895_v63 = vsel %vm867_vm3, %v4186_v62, 0.0 }
 0x24d   : > { %896 = vadd.xlane.f32.xlu0 %v895_v63 }
 0x24f   : > { %v4188_v0 = vpop.eup %4187 }
 0x250   : > { %v892_v1 = vsel %vm867_vm3, %v4188_v0, 0.0 }
 0x251   : > { %893 = vadd.xlane.f32.xlu1 %v892_v1 }
 0x253   : > { %v4190_v2 = vpop.eup %4189 }
 0x254   : > { %v901_v3 = vsel %vm867_vm3, %v4190_v2, 0.0 }
 0x255   : > { %902 = vadd.xlane.f32.xlu0 %v901_v3 }
 0x257   : > { %v4192_v4 = vpop.eup %4191 }
 0x258   : > { %v898_v13 = vsel %vm867_vm3, %v4192_v4, 0.0 }
 0x259   : > { %899 = vadd.xlane.f32.xlu1 %v898_v13 }
 0x2d6   : > { %v897_v14 = vpop.xlane.xlu0 %896 }
 0x2d7   : > { %4193 = vrcp.f32 %v897_v14 }
 0x2da   : > { %v894_v15 = vpop.xlane.xlu1 %893 }
 0x2db   : > { %4195 = vrcp.f32 %v894_v15 }
 0x2de   : > { %v903_v17 = vpop.xlane.xlu0 %902 }
 0x2df   : > { %4197 = vrcp.f32 %v903_v17 }
 0x2e2   : > { %v900_v18 = vpop.xlane.xlu1 %899 }
 0x2e3   : > { %4199 = vrcp.f32 %v900_v18 }
 0x2e4   : > { %v4194_v20 = vpop.eup %4193 }
 0x2e5   : > { %v909_v21 = vmul.f32 %v4194_v20, %v4186_v62 }
 0x2e7   : > { %v913_v22 = vpack.c.bf16 %v909_v21, %v909_v21 }
 0x2e8   : > { %v4196_v26 = vpop.eup %4195 }
 0x2e9   : > { %3829 = vmatmul.mubr.msk.bf16.vlgmr.msra.gmra.mxu0 %vm867_vm3, %v913_v22  ;;  %v908_v28 = vmul.f32 %v4196_v26, %v4188_v0  ;;  %v1102_v0 = vrot.slane %v1098_v58, %v4496_v16 }
 0x2ea   : > { %3839 = vmatpush3.bf16.msra.mxu0 %v681_v23  ;;  %3840 = vmatprep.mubr.msk.bf16.mxu0 %vm4318_vm1, %v4317_v12 }
 0x2eb   : > { %v912_v29 = vpack.c.bf16 %v908_v28, %v908_v28  ;;  %3852 = vmatprep.subr.bf16.mxu0 %v4167_v25 }
 0x2ec   : > { %v4198_v31 = vpop.eup %4197 }
 0x2ed   : > { %3823 = vmatmul.mubr.msk.bf16.vlgmr.msra.gmra.mxu1 %vm867_vm3, %v912_v29  ;;  %v911_v32 = vmul.f32 %v4198_v31, %v4190_v2 }
 0x2ee   : > { %3833 = vmatpush3.bf16.msra.mxu1 %v680_v27  ;;  %3834 = vmatprep.mubr.msk.bf16.mxu1 %vm4318_vm1, %v4317_v12 }
 0x2ef   : > { %v915_v61 = vpack.c.bf16 %v911_v32, %v911_v32  ;;  %3844 = vmatprep.subr.bf16.mxu1 %v4168_v30 }
 0x2f0   : > { %v4200_v23 = vpop.eup %4199 }
 0x2f1   : > { %3841 = vmatmul.mubr.msk.bf16.vlgmr.msra.gmra.mxu0 %vm867_vm3, %v915_v61  ;;  %v910_v33 = vmul.f32 %v4200_v23, %v4192_v4 }
 0x2f2   : > { %3853 = vmatpush3.bf16.msra.mxu0 %v4167_v25  ;;  %3856 = vmatprep.mubr.msk.bf16.mxu0 %vm404_vm0, %v4453_v7 }
 0x2f3   : > { %v914_v34 = vpack.c.bf16 %v910_v33, %v910_v33  ;;  %3854 = vmatprep.subr.bf16.mxu0 %v4169_v19 }
 0x2f5   : > { %3835 = vmatmul.mubr.msk.bf16.vlgmr.msra.gmra.mxu1 %vm867_vm3, %v914_v34 }
 0x2f6   : > { %3845 = vmatpush3.bf16.msra.mxu1 %v4168_v30  ;;  %3855 = vmatpush3.bf16.msra.mxu0 %v4169_v19 }
 0x2f7   : > { %3846 = vmatprep.subr.bf16.mxu1 %v4170_v6  ;;  %3848 = vmatprep.mubr.msk.bf16.mxu1 %vm404_vm0, %v4447_v5  ;;  %v4171_v5 = vld [vmem:[%s5043_s6 + $0x18] sm:$0xff]  }
 0x2f8   : > { %3876 = vmatprep.subr.bf16.mxu0 %v4317_v12 }
 0x2f9   : > { %3857 = vmatmul.mubr.msk.bf16.vlgmr.msra.gmra.mxu0 %vm404_vm0, %v4463_v9 }
 0x2fa   : > { %3847 = vmatpush3.bf16.msra.mxu1 %v4170_v6  ;;  %3860 = vmatprep.mubr.msk.bf16.mxu0 %vm404_vm0, %v4468_v10 }
 0x2fb   : > { %3864 = vmatprep.subr.bf16.mxu1 %v4171_v5 }
 0x2fd   : > { %3849 = vmatmul.mubr.msk.bf16.vlgmr.msra.gmra.mxu1 %vm404_vm0, %v4458_v8 }
 0x2fe   : > { %3868 = vmatprep.mubr.msk.bf16.mxu1 %vm404_vm0, %v4453_v7  ;;  %3865 = vmatpush3.bf16.msra.mxu1 %v4171_v5 }
 0x2ff   : > { %3866 = vmatprep.subr.bf16.mxu1 %v4172_v24 }
 0x301   : > { %3861 = vmatmul.mubr.msk.bf16.gmra.mxu0 %vm404_vm0, %v4475_v11 }
 0x302   : > { %3878 = vmatprep.mubr.msk.bf16.mxu0 %vm4318_vm1, %v4317_v12  ;;  %3867 = vmatpush3.bf16.msra.mxu1 %v4172_v24 }
 0x303   : > { %3882 = vmatprep.subr.bf16.mxu1 %v4317_v12 }
 0x305   : > { %3869 = vmatmul.mubr.msk.bf16.vlgmr.msra.gmra.mxu1 %vm404_vm0, %v4463_v9 }
 0x306   : > { %3872 = vmatprep.mubr.msk.bf16.mxu1 %vm404_vm0, %v4468_v10 }
 0x30d   : > { %3873 = vmatmul.mubr.msk.bf16.gmra.mxu1 %vm404_vm0, %v4475_v11 }
 0x30e   : > { %3884 = vmatprep.mubr.msk.bf16.mxu1 %vm4318_vm1, %v4317_v12 }
 0x3a9   : > { %v4607_v27 = vpop.f32.mrf.mxu0 }
 0x3ab   : > { %v3830_v35 = vpop.f32.mrf.mxu0 }
 0x3ad   : > { %v4609_v36 = vpop.f32.mrf.mxu1  ;;  %v999_v37 = vpop.f32.mrf.mxu0 }
 0x3ae   : > { %v1088_v38 = vpack.c.bf16 %v4607_v27, %v4609_v36  ;;  %v4174_v27 = vld [vmem:[%s5041_s4 + $0x20] sm:$0xff]  }
 0x3af   : > { %v3824_v39 = vpop.f32.mrf.mxu1  ;;  %v3831_v40 = vpop.f32.mrf.mxu0  ;;  %v3528_v36 = vld [vmem:[%s5045_s8 + $0x4] sm:$0xf] }
 0x3b1   : > { %v956_v41 = vpop.f32.mrf.mxu1  ;;  %v4613_v42 = vpop.f32.mrf.mxu0 }
 0x3b3   : > { %v3825_v43 = vpop.f32.mrf.mxu1  ;;  %v3842_v44 = vpop.f32.mrf.mxu0 }
 0x3b5   : > { %v4618_v46 = vpop.f32.mrf.mxu1  ;;  %v1085_v47 = vpop.f32.mrf.mxu0 }
 0x3b6   : > { %v1089_v48 = vpack.c.bf16 %v4613_v42, %v4618_v46  ;;  %v1264_v47 = vunpack.c.l.bf16 %v3513_v45 }
 0x3b7   : > { %v3836_v50 = vpop.f32.mrf.mxu1  ;;  %v3843_v51 = vpop.f32.mrf.mxu0 }
 0x3b8   : > { %v1268_v49 = vrot.slane %v1264_v47, %v4496_v16 }
 0x3b9   : > { %v1042_v53 = vpop.f32.mrf.mxu1  ;;  %v3858_v54 = vpop.f32.mrf.mxu0 }
 0x3ba   : > { %v1235_v62 = vadd.f32 %v3858_v54, %v1179_v55 }
 0x3bb   : > { %v3837_v56 = vpop.f32.mrf.mxu1  ;;  %v1226_v57 = vpop.f32.mrf.mxu0 }
 0x3bc   : > { %v1227_v3 = vadd.f32 %v1226_v57, %v1179_v55 }
 0x3bd   : > { %v3850_v59 = vpop.f32.mrf.mxu1  ;;  %v3859_v60 = vpop.f32.mrf.mxu0 }
 0x3be   : > { %v1238_v63 = vadd.f32 %v3859_v60, %v1179_v55  ;;  %v1158_v35 = vadd.f32 %v3850_v59, %v1102_v0 }
 0x3bf   : > { %v1149_v1 = vpop.f32.mrf.mxu1  ;;  %v1229_v2 = vpop.f32.mrf.mxu0 }
 0x3c0   : > { %v1351_v4 = vpack.c.bf16 %v1238_v63, %v1235_v62  ;;  %v1230_v13 = vadd.f32 %v1229_v2, %v1179_v55  ;;  %v1150_v18 = vadd.f32 %v1149_v1, %v1102_v0  ;;  %v1166_v41 = vmul.f32 0.35355338, %v1158_v35 }
 0x3c1   : > { %v3851_v14 = vpop.f32.mrf.mxu1  ;;  %v3862_v15 = vpop.f32.mrf.mxu0 }
 0x3c2   : > { %v1350_v17 = vpack.c.bf16 %v1230_v13, %v1227_v3  ;;  %v1408_v22 = vsel %vm682_vm2, %v1351_v4, 0  ;;  %v1251_v29 = vadd.f32 %v3862_v15, %v1179_v55  ;;  %v1164_v32 = vmul.f32 0.35355338, %v1150_v18 }
 0x3c3   : > { %v1152_v20 = vpop.f32.mrf.mxu1  ;;  %v1242_v21 = vpop.f32.mrf.mxu0  ;;  %3883 = vmatpush3.bf16.xpose.msra.mxu1 %v1408_v22  ;;  %v1161_v6 = vadd.f32 %v3851_v14, %v1102_v0  ;;  %v1348_v44 = vpack.c.bf16 %v1166_v41, %v1166_v41 }
 0x3c4   : > { %v1153_v25 = vadd.f32 %v1152_v20, %v1102_v0  ;;  %v1362_v28 = vsel %vm682_vm2, %v1350_v17, 0  ;;  %3894 = vmatprep.subr.bf16.mxu1 %v4317_v12  ;;  %v1243_v23 = vadd.f32 %v1242_v21, %v1179_v55  ;;  %v1346_v37 = vpack.c.bf16 %v1164_v32, %v1164_v32 }
 0x3c5   : > { %v3863_v26 = vpop.f32.mrf.mxu0  ;;  %3877 = vmatpush3.bf16.xpose.msra.mxu0 %v1362_v28  ;;  %v1167_v40 = vmul.f32 0.35355338, %v1161_v6  ;;  %v3870_v50 = vpop.f32.mrf.mxu1 }
 0x3c6   : > { %v1165_v30 = vmul.f32 0.35355338, %v1153_v25  ;;  %v1254_v31 = vadd.f32 %v3863_v26, %v1179_v55  ;;  %3888 = vmatprep.subr.bf16.mxu0 %v4317_v12  ;;  %v1324_v52 = vadd.f32 %v3870_v50, %v1268_v49 }
 0x3c7   : > { %v1245_v61 = vpop.f32.mrf.mxu0  ;;  %v1349_v43 = vpack.c.bf16 %v1167_v40, %v1167_v40  ;;  %v1315_v51 = vpop.f32.mrf.mxu1 }
 0x3c8   : > { %v1347_v19 = vpack.c.bf16 %v1165_v30, %v1165_v30  ;;  %v1353_v33 = vpack.c.bf16 %v1254_v31, %v1251_v29  ;;  %v1246_v34 = vadd.f32 %v1245_v61, %v1179_v55  ;;  %v1316_v54 = vadd.f32 %v1315_v51, %v1268_v49 }
 0x3c9   : > { %v3871_v53 = vpop.f32.mrf.mxu1 }
 0x3ca   : > { %v1352_v5 = vpack.c.bf16 %v1246_v34, %v1243_v23  ;;  %v1500_v24 = vsel %vm682_vm2, %v1353_v33, 0  ;;  %3885 = vmatmul.mubr.msk.bf16.vlgmr.msra.gmra.mxu1 %vm682_vm2, %v1347_v19  ;;  %v1327_v55 = vadd.f32 %v3871_v53, %v1268_v49 }
 0x3cb   : > { %3895 = vmatpush3.bf16.xpose.msra.mxu1 %v1500_v24  ;;  %3896 = vmatprep.mubr.msk.bf16.mxu1 %vm4318_vm1, %v4317_v12  ;;  %v1318_v56 = vpop.f32.mrf.mxu1 }
 0x3cc   : > { %v1454_v39 = vsel %vm682_vm2, %v1352_v5, 0  ;;  %3879 = vmatmul.mubr.msk.bf16.vlgmr.msra.gmra.mxu0 %vm682_vm2, %v1346_v37  ;;  %3906 = vmatprep.subr.bf16.mxu1 %v4317_v12  ;;  %v1355_v57 = vpack.c.bf16 %v1327_v55, %v1324_v52  ;;  %v1319_v58 = vadd.f32 %v1318_v56, %v1268_v49 }
 0x3cd   : > { %3889 = vmatpush3.bf16.xpose.msra.mxu0 %v1454_v39  ;;  %3890 = vmatprep.mubr.msk.bf16.mxu0 %vm4318_vm1, %v4317_v12  ;;  %v3874_v59 = vpop.f32.mrf.mxu1 }
 0x3ce   : > { %3900 = vmatprep.subr.bf16.mxu0 %v4317_v12  ;;  %v1354_v60 = vpack.c.bf16 %v1319_v58, %v1316_v54  ;;  %v4651_v62 = vadd.f32 %v3874_v59, %v1268_v49 }
 0x3cf   : > { %v1331_v63 = vpop.f32.mrf.mxu1 }
 0x3d0   : > { %v4654_v0 = vadd.f32 %v1331_v63, %v1268_v49 }
 0x3d1   : > { %v3875_v1 = vpop.f32.mrf.mxu1 }
 0x3d2   : > { %3897 = vmatmul.mubr.msk.bf16.vlgmr.msra.gmra.mxu1 %vm682_vm2, %v1349_v43  ;;  %v4657_v2 = vadd.f32 %v3875_v1, %v1268_v49 }
 0x3d3   : > { %3908 = vmatprep.mubr.msk.bf16.mxu1 %vm4318_vm1, %v4317_v12  ;;  %3907 = vmatpush3.bf16.msra.mxu1 %v1355_v57  ;;  %v1334_v3 = vpop.f32.mrf.mxu1 }
 0x3d4   : > { %3891 = vmatmul.mubr.msk.bf16.vlgmr.msra.gmra.mxu0 %vm682_vm2, %v1348_v44  ;;  %3918 = vmatprep.subr.bf16.mxu1 %v4317_v12  ;;  %v1357_v4 = vpack.c.bf16 %v4657_v2, %v4651_v62  ;;  %v4661_v13 = vadd.f32 %v1334_v3, %v1268_v49 }
 0x3d5   : > { %3902 = vmatprep.mubr.msk.bf16.mxu0 %vm4318_vm1, %v4317_v12  ;;  %3901 = vmatpush3.bf16.msra.mxu0 %v1354_v60 }
 0x3d6   : > { %3912 = vmatprep.subr.bf16.mxu0 %v4317_v12  ;;  %v1356_v14 = vpack.c.bf16 %v4661_v13, %v4654_v0  ;;  %v4173_v0 = vld [vmem:[%s5041_s4 + $0x28] sm:$0xff]  }
 0x48a   : > { %v1444_v15 = vpop.f32.mrf.mxu1 }
 0x48b   : > { %v1545_v17 = vsel %vm867_vm3, %v1444_v15, -inf }
 0x48c   : > { %1546 = vmax.xlane.f32.xlu1 %v1545_v17  ;;  %v1398_v18 = vpop.f32.mrf.mxu0  ;;  %v3886_v20 = vpop.f32.mrf.mxu1 }
 0x48d   : > { %v1542_v21 = vsel %vm867_vm3, %v1398_v18, -inf }
 0x48e   : > { %v1447_v22 = vpop.f32.mrf.mxu1  ;;  %1543 = vmax.xlane.f32.xlu0 %v1542_v21  ;;  %v3880_v25 = vpop.f32.mrf.mxu0  ;;  %v1090_v21 = vld [vmem:[%s5045_s8] sm:$0xf] }
 0x48f   : > { %v1832_v2 = vsel %vm1772_vm4, %v1090_v21, 0 }
 0x490   : > { %v1401_v26 = vpop.f32.mrf.mxu0  ;;  %v3887_v28 = vpop.f32.mrf.mxu1 }
 0x492   : > { %v3881_v29 = vpop.f32.mrf.mxu0  ;;  %v1536_v30 = vpop.f32.mrf.mxu1 }
 0x493   : > { %v1551_v31 = vsel %vm867_vm3, %v1536_v30, -inf }
 0x494   : > { %1552 = vmax.xlane.f32.xlu1 %v1551_v31  ;;  %v1490_v32 = vpop.f32.mrf.mxu0  ;;  %v3898_v61 = vpop.f32.mrf.mxu1 }
 0x495   : > { %v1548_v19 = vsel %vm867_vm3, %v1490_v32, -inf }
 0x496   : > { %v1539_v23 = vpop.f32.mrf.mxu1  ;;  %1549 = vmax.xlane.f32.xlu0 %v1548_v19  ;;  %v3892_v33 = vpop.f32.mrf.mxu0 }
 0x498   : > { %v1493_v34 = vpop.f32.mrf.mxu0  ;;  %v3899_v6 = vpop.f32.mrf.mxu1 }
 0x499   : > { %v4176_v6 = vld [vmem:[%s5039_s2 + $0x20] sm:$0xff]  }
 0x49a   : > { %v3893_v5 = vpop.f32.mrf.mxu0 }
 0x515   : > { %v1547_v24 = vpop.xlane.xlu1 %1546 }
 0x516   : > { %v1555_v35 = vsub.f32 %v1444_v15, %v1547_v24 }
 0x517   : > { %v1544_v37 = vpop.xlane.xlu0 %1543 }
 0x518   : > { %v1560_v39 = vmul.f32 1.442695, %v1555_v35  ;;  %v1554_v40 = vsub.f32 %v1398_v18, %v1544_v37 }
 0x51a   : > { %4201 = vpow2.f32 %v1560_v39  ;;  %v1558_v41 = vmul.f32 1.442695, %v1554_v40  ;;  %v4731_v39 = vld [vmem:[%s4439_s25] sm:$0xff]   ;;  %v4177_v40 = vld [vmem:[%s5043_s6 + $0x28] sm:$0xff]  }
 0x51c   : > { %4203 = vpow2.f32 %v1558_v41 }
 0x51d   : > { %v1553_v43 = vpop.xlane.xlu1 %1552 }
 0x51e   : > { %v1557_v44 = vsub.f32 %v1536_v30, %v1553_v43  ;;  %v4178_v43 = vld [vmem:[%s5043_s6 + $0x20] sm:$0xff]  }
 0x51f   : > { %v1550_v45 = vpop.xlane.xlu0 %1549 }
 0x520   : > { %v1564_v47 = vmul.f32 1.442695, %v1557_v44  ;;  %v1556_v49 = vsub.f32 %v1490_v32, %v1550_v45  ;;  %v4744_v44 = vld [vmem:[%s4444_s28] sm:$0xff]  }
 0x522   : > { %4205 = vpow2.f32 %v1564_v47  ;;  %v1562_v50 = vmul.f32 1.442695, %v1556_v49  ;;  %v3546_v47 = vld [vmem:[%s5042_s5 + $0x2] sm:$0x1] }
 0x524   : > { %4207 = vpow2.f32 %v1562_v50 }
 0x527   : > { %v4202_v51 = vpop.eup %4201 }
 0x528   : > { %v1569_v52 = vsel %vm867_vm3, %v4202_v51, 0.0 }
 0x529   : > { %v4204_v53 = vpop.eup %4203  ;;  %1570 = vadd.xlane.f32.xlu1 %v1569_v52 }
 0x52a   : > { %v1566_v54 = vsel %vm867_vm3, %v4204_v53, 0.0 }
 0x52b   : > { %1567 = vadd.xlane.f32.xlu0 %v1566_v54 }
 0x52f   : > { %v4206_v55 = vpop.eup %4205 }
 0x530   : > { %v1575_v56 = vsel %vm867_vm3, %v4206_v55, 0.0 }
 0x531   : > { %v4208_v57 = vpop.eup %4207  ;;  %1576 = vadd.xlane.f32.xlu1 %v1575_v56 }
 0x532   : > { %v1572_v58 = vsel %vm867_vm3, %v4208_v57, 0.0 }
 0x533   : > { %1573 = vadd.xlane.f32.xlu0 %v1572_v58 }
 0x5b2   : > { %v1571_v59 = vpop.xlane.xlu1 %1570 }
 0x5b3   : > { %4209 = vrcp.f32 %v1571_v59 }
 0x5b4   : > { %v1568_v60 = vpop.xlane.xlu0 %1567 }
 0x5b5   : > { %4211 = vrcp.f32 %v1568_v60 }
 0x5ba   : > { %v1577_v63 = vpop.xlane.xlu1 %1576 }
 0x5bb   : > { %4213 = vrcp.f32 %v1577_v63 }
 0x5bc   : > { %v1574_v1 = vpop.xlane.xlu0 %1573 }
 0x5bd   : > { %4215 = vrcp.f32 %v1574_v1 }
 0x5c0   : > { %v4210_v3 = vpop.eup %4209 }
 0x5c1   : > { %v1583_v15 = vmul.f32 %v4210_v3, %v4202_v51 }
 0x5c2   : > { %v4212_v17 = vpop.eup %4211 }
 0x5c3   : > { %v1587_v18 = vpack.c.bf16 %v1583_v15, %v1583_v15  ;;  %v1582_v20 = vmul.f32 %v4212_v17, %v4204_v53 }
 0x5c5   : > { %3909 = vmatmul.mubr.msk.bf16.vlgmr.msra.gmra.mxu1 %vm867_vm3, %v1587_v18  ;;  %v1586_v22 = vpack.c.bf16 %v1582_v20, %v1582_v20  ;;  %v3537_v20 = vld [vmem:[%s5040_s3 + $0x2] sm:$0x1] }
 0x5c6   : > { %3919 = vmatpush3.bf16.msra.mxu1 %v1357_v4  ;;  %3920 = vmatprep.mubr.msk.bf16.mxu1 %vm4318_vm1, %v4317_v12 }
 0x5c7   : > { %3903 = vmatmul.mubr.msk.bf16.vlgmr.msra.gmra.mxu0 %vm867_vm3, %v1586_v22  ;;  %4109 = vmatprep.subr.msk.bf16.mxu1 %vm1772_vm4, %v1090_v21 }
 0x5c8   : > { %v4214_v25 = vpop.eup %4213  ;;  %3913 = vmatpush3.bf16.msra.mxu0 %v1356_v14  ;;  %3914 = vmatprep.mubr.msk.bf16.mxu0 %vm4318_vm1, %v4317_v12 }
 0x5c9   : > { %v1585_v26 = vmul.f32 %v4214_v25, %v4206_v55  ;;  %4108 = vmatprep.subr.msk.bf16.mxu0 %vm1772_vm4, %v3528_v36  ;;  %v1890_v25 = vunpack.c.l.bf16 %v3537_v20 }
 0x5ca   : > { %v4216_v28 = vpop.eup %4215 }
 0x5cb   : > { %v1589_v29 = vpack.c.bf16 %v1585_v26, %v1585_v26  ;;  %v1584_v62 = vmul.f32 %v4216_v28, %v4208_v57 }
 0x5cd   : > { %3921 = vmatmul.mubr.msk.bf16.vlgmr.msra.gmra.mxu1 %vm867_vm3, %v1589_v29  ;;  %v1588_v4 = vpack.c.bf16 %v1584_v62, %v1584_v62 }
 0x5ce   : > { %3932 = vmatprep.mubr.msk.bf16.mxu1 %vm682_vm2, %v1088_v38  ;;  %3931 = vmatpush3.bf16.msra.mxu1 %v1832_v2  ;;  %v4175_v38 = vld [vmem:[%s5039_s2 + $0x28] sm:$0xff]   ;;  %v1894_v2 = vrot.slane %v1890_v25, %v4496_v16 }
 0x5cf   : > { %3915 = vmatmul.mubr.msk.bf16.vlgmr.msra.gmra.mxu0 %vm867_vm3, %v1588_v4  ;;  %3944 = vmatprep.subr.bf16.mxu1 %v4173_v0 }
 0x5d5   : > { %3933 = vmatmul.mubr.msk.bf16.vlgmr.msra.gmra.mxu1 %vm682_vm2, %v1089_v48 }
 0x5d6   : > { %3948 = vmatprep.mubr.msk.bf16.mxu1 %vm404_vm0, %v4453_v7  ;;  %3945 = vmatpush3.bf16.msra.mxu1 %v4173_v0  ;;  %v1774_v7 = vsel %vm1772_vm4, %v3528_v36, 0  ;;  %v3557_v0 = vld [vmem:[%s5044_s7 + $0x2] sm:$0x1] }
 0x5d7   : > { %3946 = vmatprep.subr.bf16.mxu1 %v4174_v27  ;;  %3925 = vmatpush3.bf16.msra.mxu0 %v1774_v7 }
 0x5d8   : > { %3936 = vmatprep.subr.bf16.mxu0 %v4175_v38 }
 0x5da   : > { %3947 = vmatpush3.bf16.msra.mxu1 %v4174_v27 }
 0x5db   : > { %3968 = vmatprep.subr.bf16.mxu1 %v4317_v12 }
 0x5dd   : > { %3949 = vmatmul.mubr.msk.bf16.vlgmr.msra.gmra.mxu1 %vm404_vm0, %v4463_v9 }
 0x5de   : > { %3952 = vmatprep.mubr.msk.bf16.mxu1 %vm404_vm0, %v4468_v10 }
 0x5e5   : > { %3953 = vmatmul.mubr.msk.bf16.gmra.mxu1 %vm404_vm0, %v4475_v11 }
 0x5e6   : > { %3970 = vmatprep.mubr.msk.bf16.mxu1 %vm4318_vm1, %v4317_v12 }
 0x685   : > { %v1670_v42 = vpop.f32.mrf.mxu1 }
 0x687   : > { %v1627_v46 = vpop.f32.mrf.mxu0  ;;  %v3910_v48 = vpop.f32.mrf.mxu1 }
 0x688   : > { %v1762_v13 = vpack.c.bf16 %v1670_v42, %v1627_v46  ;;  %v2056_v48 = vunpack.c.l.bf16 %v3557_v0 }
 0x689   : > { %v3904_v14 = vpop.f32.mrf.mxu0  ;;  %v1673_v30 = vpop.f32.mrf.mxu1 }
 0x68a   : > { %3926 = vmatprep.mubr.msk.bf16.mxu0 %vm682_vm2, %v1762_v13 }
 0x68b   : > { %v1630_v31 = vpop.f32.mrf.mxu0  ;;  %v3911_v32 = vpop.f32.mrf.mxu1 }
 0x68d   : > { %v3905_v61 = vpop.f32.mrf.mxu0  ;;  %v1756_v19 = vpop.f32.mrf.mxu1 }
 0x68f   : > { %v1713_v23 = vpop.f32.mrf.mxu0  ;;  %v3922_v33 = vpop.f32.mrf.mxu1 }
 0x690   : > { %v1763_v34 = vpack.c.bf16 %v1756_v19, %v1713_v23  ;;  %v2060_v33 = vrot.slane %v2056_v48, %v4496_v16 }
 0x691   : > { %v3916_v5 = vpop.f32.mrf.mxu0  ;;  %v1759_v24 = vpop.f32.mrf.mxu1 }
 0x692   : > { %3927 = vmatmul.mubr.msk.bf16.vlgmr.msra.gmra.mxu0 %vm682_vm2, %v1763_v34 }
 0x693   : > { %v1716_v35 = vpop.f32.mrf.mxu0  ;;  %v3923_v37 = vpop.f32.mrf.mxu1  ;;  %3937 = vmatpush3.bf16.msra.mxu0 %v4175_v38  ;;  %3940 = vmatprep.mubr.msk.bf16.mxu0 %vm404_vm0, %v4731_v39 }
 0x694   : > { %3938 = vmatprep.subr.bf16.mxu0 %v4176_v6 }
 0x695   : > { %v3917_v41 = vpop.f32.mrf.mxu0 }
 0x697   : > { %3939 = vmatpush3.bf16.msra.mxu0 %v4176_v6 }
 0x698   : > { %3956 = vmatprep.subr.bf16.mxu0 %v4177_v40 }
 0x69a   : > { %3941 = vmatmul.mubr.msk.bf16.vlgmr.msra.gmra.mxu0 %vm404_vm0, %v4458_v8  ;;  %v4757_v8 = vpop.f32.mrf.mxu1 }
 0x69b   : > { %3957 = vmatpush3.bf16.msra.mxu0 %v4177_v40  ;;  %3960 = vmatprep.mubr.msk.bf16.mxu0 %vm404_vm0, %v4744_v44 }
 0x69c   : > { %3958 = vmatprep.subr.bf16.mxu0 %v4178_v43  ;;  %v4759_v45 = vpop.f32.mrf.mxu1 }
 0x69e   : > { %v4764_v49 = vpop.f32.mrf.mxu1 }
 0x69f   : > { %3959 = vmatpush3.bf16.msra.mxu0 %v4178_v43 }
 0x6a0   : > { %3974 = vmatprep.subr.bf16.mxu0 %v4317_v12  ;;  %v4766_v50 = vpop.f32.mrf.mxu1 }
 0x6a2   : > { %3961 = vmatmul.mubr.msk.bf16.vlgmr.msra.gmra.mxu0 %vm404_vm0, %v4463_v9  ;;  %v1967_v9 = vunpack.c.l.bf16 %v3546_v47  ;;  %v3950_v51 = vpop.f32.mrf.mxu1 }
 0x6a3   : > { %3964 = vmatprep.mubr.msk.bf16.mxu0 %vm404_vm0, %v4468_v10 }
 0x6a4   : > { %v1971_v10 = vrot.slane %v1967_v9, %v4496_v16 }
 0x6a6   : > { %v2027_v52 = vadd.f32 %v3950_v51, %v1971_v10 }
 0x6aa   : > { %3965 = vmatmul.mubr.msk.bf16.gmra.mxu0 %vm404_vm0, %v4475_v11  ;;  %v2018_v11 = vpop.f32.mrf.mxu1 }
 0x6ab   : > { %3976 = vmatprep.mubr.msk.bf16.mxu0 %vm4318_vm1, %v4317_v12  ;;  %v2019_v54 = vadd.f32 %v2018_v11, %v1971_v10 }
 0x6ac   : > { %v3951_v53 = vpop.f32.mrf.mxu1 }
 0x6ad   : > { %v2030_v55 = vadd.f32 %v3951_v53, %v1971_v10 }
 0x6ae   : > { %v2021_v56 = vpop.f32.mrf.mxu1 }
 0x6af   : > { %v2143_v57 = vpack.c.bf16 %v2030_v55, %v2027_v52  ;;  %v2022_v58 = vadd.f32 %v2021_v56, %v1971_v10 }
 0x6b0   : > { %v3954_v1 = vpop.f32.mrf.mxu1 }
 0x6b1   : > { %v2142_v59 = vpack.c.bf16 %v2022_v58, %v2019_v54  ;;  %v2200_v63 = vsel %vm682_vm2, %v2143_v57, 0  ;;  %v2043_v38 = vadd.f32 %v3954_v1, %v1971_v10 }
 0x6b2   : > { %3975 = vmatpush3.bf16.xpose.msra.mxu0 %v2200_v63  ;;  %v2034_v3 = vpop.f32.mrf.mxu1 }
 0x6b3   : > { %v2154_v60 = vsel %vm682_vm2, %v2142_v59, 0  ;;  %3986 = vmatprep.subr.bf16.mxu0 %v4317_v12  ;;  %v2035_v28 = vadd.f32 %v2034_v3, %v1971_v10 }
 0x6b4   : > { %3969 = vmatpush3.bf16.xpose.msra.mxu1 %v2154_v60  ;;  %v3955_v17 = vpop.f32.mrf.mxu1 }
 0x6b5   : > { %3980 = vmatprep.subr.bf16.mxu1 %v4317_v12  ;;  %v2046_v42 = vadd.f32 %v3955_v17, %v1971_v10 }
 0x6b6   : > { %v2037_v22 = vpop.f32.mrf.mxu1 }
 0x6b7   : > { %v2038_v29 = vadd.f32 %v2037_v22, %v1971_v10  ;;  %v2145_v19 = vpack.c.bf16 %v2046_v42, %v2043_v38 }
 0x6b9   : > { %v2144_v36 = vpack.c.bf16 %v2038_v29, %v2035_v28  ;;  %v2292_v37 = vsel %vm682_vm2, %v2145_v19, 0 }
 0x6bb   : > { %v2246_v32 = vsel %vm682_vm2, %v2144_v36, 0 }
 0x752   : > { %v4773_v15 = vpop.f32.mrf.mxu0 }
 0x754   : > { %v4775_v18 = vpop.f32.mrf.mxu0 }
 0x756   : > { %v4780_v21 = vpop.f32.mrf.mxu0 }
 0x758   : > { %v4782_v26 = vpop.f32.mrf.mxu0 }
 0x75a   : > { %v3942_v62 = vpop.f32.mrf.mxu0 }
 0x75b   : > { %v1950_v14 = vadd.f32 %v3942_v62, %v1894_v2 }
 0x75c   : > { %v1941_v4 = vpop.f32.mrf.mxu0 }
 0x75d   : > { %v1942_v27 = vadd.f32 %v1941_v4, %v1894_v2  ;;  %v1958_v6 = vmul.f32 0.35355338, %v1950_v14 }
 0x75e   : > { %v3943_v7 = vpop.f32.mrf.mxu0 }
 0x75f   : > { %v1956_v46 = vmul.f32 0.35355338, %v1942_v27  ;;  %v1953_v5 = vadd.f32 %v3943_v7, %v1894_v2  ;;  %v2140_v9 = vpack.c.bf16 %v1958_v6, %v1958_v6 }
 0x760   : > { %v1944_v13 = vpop.f32.mrf.mxu0 }
 0x761   : > { %v2138_v30 = vpack.c.bf16 %v1956_v46, %v1956_v46  ;;  %v1945_v31 = vadd.f32 %v1944_v13, %v1894_v2  ;;  %v1959_v10 = vmul.f32 0.35355338, %v1953_v5 }
 0x762   : > { %v3962_v61 = vpop.f32.mrf.mxu0 }
 0x763   : > { %v1957_v23 = vmul.f32 0.35355338, %v1945_v31  ;;  %3971 = vmatmul.mubr.msk.bf16.vlgmr.msra.gmra.mxu1 %vm682_vm2, %v2138_v30  ;;  %v2116_v41 = vadd.f32 %v3962_v61, %v2060_v33  ;;  %v2141_v56 = vpack.c.bf16 %v1959_v10, %v1959_v10 }
 0x764   : > { %3981 = vmatpush3.bf16.xpose.msra.mxu1 %v2246_v32  ;;  %3982 = vmatprep.mubr.msk.bf16.mxu1 %vm4318_vm1, %v4317_v12  ;;  %v2107_v34 = vpop.f32.mrf.mxu0 }
 0x765   : > { %v2139_v24 = vpack.c.bf16 %v1957_v23, %v1957_v23  ;;  %3992 = vmatprep.subr.bf16.mxu1 %v4317_v12  ;;  %v2108_v40 = vadd.f32 %v2107_v34, %v2060_v33 }
 0x766   : > { %v3963_v35 = vpop.f32.mrf.mxu0 }
 0x767   : > { %3977 = vmatmul.mubr.msk.bf16.vlgmr.msra.gmra.mxu0 %vm682_vm2, %v2139_v24  ;;  %v2119_v43 = vadd.f32 %v3963_v35, %v2060_v33 }
 0x768   : > { %3987 = vmatpush3.bf16.xpose.msra.mxu0 %v2292_v37  ;;  %3988 = vmatprep.mubr.msk.bf16.mxu0 %vm4318_vm1, %v4317_v12  ;;  %v2110_v47 = vpop.f32.mrf.mxu0 }
 0x769   : > { %v2111_v51 = vadd.f32 %v2110_v47, %v2060_v33  ;;  %3998 = vmatprep.subr.bf16.mxu0 %v4317_v12  ;;  %v2147_v54 = vpack.c.bf16 %v2119_v43, %v2116_v41 }
 0x76a   : > { %v3966_v11 = vpop.f32.mrf.mxu0 }
 0x76b   : > { %3983 = vmatmul.mubr.msk.bf16.vlgmr.msra.gmra.mxu1 %vm682_vm2, %v2140_v9  ;;  %v2146_v52 = vpack.c.bf16 %v2111_v51, %v2108_v40  ;;  %v4800_v53 = vadd.f32 %v3966_v11, %v2060_v33 }
 0x76c   : > { %v2123_v55 = vpop.f32.mrf.mxu0  ;;  %3994 = vmatprep.mubr.msk.bf16.mxu1 %vm4318_vm1, %v4317_v12 }
 0x76d   : > { %v4804_v57 = vadd.f32 %v2123_v55, %v2060_v33  ;;  %3993 = vmatpush3.bf16.msra.mxu1 %v2146_v52 }
 0x76e   : > { %v3967_v58 = vpop.f32.mrf.mxu0  ;;  %4004 = vmatprep.subr.bf16.mxu1 %v4317_v12 }
 0x76f   : > { %3989 = vmatmul.mubr.msk.bf16.vlgmr.msra.gmra.mxu0 %vm682_vm2, %v2141_v56  ;;  %v4808_v59 = vadd.f32 %v3967_v58, %v2060_v33 }
 0x770   : > { %3999 = vmatpush3.bf16.msra.mxu0 %v2147_v54  ;;  %v2126_v60 = vpop.f32.mrf.mxu0  ;;  %4000 = vmatprep.mubr.msk.bf16.mxu0 %vm4318_vm1, %v4317_v12 }
 0x771   : > { %v2149_v63 = vpack.c.bf16 %v4808_v59, %v4800_v53  ;;  %v4814_v1 = vadd.f32 %v2126_v60, %v2060_v33  ;;  %4010 = vmatprep.subr.bf16.mxu0 %v4317_v12  ;;  %v3572_v53 = vld [vmem:[%s5045_s8 + $0x8] sm:$0xf] }
 0x772   : > { %v2565_v59 = vsel %vm1772_vm4, %v3572_v53, 0 }
 0x773   : > { %v2148_v3 = vpack.c.bf16 %v4814_v1, %v4804_v57 }
 0x823   : > { %v2190_v17 = vpop.f32.mrf.mxu1 }
 0x824   : > { %v2334_v20 = vsel %vm867_vm3, %v2190_v17, -inf }
 0x825   : > { %2335 = vmax.xlane.f32.xlu0 %v2334_v20  ;;  %v3972_v22 = vpop.f32.mrf.mxu1 }
 0x827   : > { %v2193_v25 = vpop.f32.mrf.mxu1  ;;  %v2236_v28 = vpop.f32.mrf.mxu0 }
 0x828   : > { %v2337_v29 = vsel %vm867_vm3, %v2236_v28, -inf }
 0x829   : > { %2338 = vmax.xlane.f32.xlu1 %v2337_v29  ;;  %v3973_v62 = vpop.f32.mrf.mxu1  ;;  %v3978_v2 = vpop.f32.mrf.mxu0 }
 0x82b   : > { %v2239_v4 = vpop.f32.mrf.mxu0  ;;  %v2282_v0 = vpop.f32.mrf.mxu1 }
 0x82c   : > { %v2340_v27 = vsel %vm867_vm3, %v2282_v0, -inf  ;;  %v4251_v4 = vld [vmem:[%s4439_s25 + $0x8] sm:$0xff]   ;;  %s4259_s25 = sshll.u32 %s4319_s21, 4  ;;  %s4260_s25 = int_to_ptr.vmem [resolvable:$false] %s4259_s25 }
 0x82d   : > { %v3979_v36 = vpop.f32.mrf.mxu0  ;;  %2341 = vmax.xlane.f32.xlu0 %v2340_v27  ;;  %v3984_v7 = vpop.f32.mrf.mxu1  ;;  %s4261_s22 = scalar_lea.vmem %s4260_s25, 1024  ;;  %p4262_p0 = scmp.lt.s32.totalorder %s4987_s23, %s4260_s25 }
 0x82e   : > { %p4263_p1 = scmp.lt.s32.totalorder %s4261_s22, %s4255_s17 }
 0x82f   : > { %v2285_v38 = vpop.f32.mrf.mxu1  ;;  %v2328_v42 = vpop.f32.mrf.mxu0 }
 0x830   : > { %v2343_v46 = vsel %vm867_vm3, %v2328_v42, -inf  ;;  %p4264_p2 = por %p4263_p1, %p4262_p0 }
 0x831   : > { %2344 = vmax.xlane.f32.xlu1 %v2343_v46  ;;  %v3985_v48 = vpop.f32.mrf.mxu1  ;;  %v3990_v13 = vpop.f32.mrf.mxu0 }
 0x832   : > { %p4265_p3 = pnand %p4264_p2, %p4258_p13 }
 0x833   : > { %v2331_v14 = vpop.f32.mrf.mxu0 }
 0x835   : > { %v3991_v30 = vpop.f32.mrf.mxu0 }
 0x8ae   : > { %v2336_v31 = vpop.xlane.xlu0 %2335 }
 0x8af   : > { %v2346_v32 = vsub.f32 %v2190_v17, %v2336_v31 }
 0x8b1   : > { %v2350_v61 = vmul.f32 1.442695, %v2346_v32 }
 0x8b2   : > { %v2339_v19 = vpop.xlane.xlu1 %2338 }
 0x8b3   : > { %4217 = vpow2.f32 %v2350_v61  ;;  %v2347_v23 = vsub.f32 %v2236_v28, %v2339_v19  ;;  %v4181_v19 = vld [vmem:[%s5041_s4 + $0x30] sm:$0xff]  }
 0x8b5   : > { %v2352_v33 = vmul.f32 1.442695, %v2347_v23 }
 0x8b6   : > { %v2342_v34 = vpop.xlane.xlu0 %2341 }
 0x8b7   : > { %4219 = vpow2.f32 %v2352_v33  ;;  %v2348_v6 = vsub.f32 %v2282_v0, %v2342_v34 }
 0x8b9   : > { %v2354_v5 = vmul.f32 1.442695, %v2348_v6 }
 0x8ba   : > { %v2345_v24 = vpop.xlane.xlu1 %2344 }
 0x8bb   : > { %4221 = vpow2.f32 %v2354_v5  ;;  %v2349_v35 = vsub.f32 %v2328_v42, %v2345_v24  ;;  %v4252_v5 = vld [vmem:[%s4444_s28 + $0x8] sm:$0xff]   ;;  %v4253_v24 = vld [vmem:[%s4444_s28 + $0x10] sm:$0xff]  }
 0x8bd   : > { %v2356_v37 = vmul.f32 1.442695, %v2349_v35  ;;  %v4254_v35 = vld [vmem:[%s4444_s28 + $0x18] sm:$0xff]   ;;  %s3623_s28 = sshll.u32 %s4393_s13, 9  ;;  %s4997_s13 = scalar_lea.sflag [#allocation3], %s342_s24 }
 0x8be   : > { %s4994_s16 = scalar_lea.hbm %s5046_s9, %s3623_s28 }
 0x8bf   : > { %4223 = vpow2.f32 %v2356_v37  ;;  %v4184_v37 = vld [vmem:[%s5043_s6 + $0x30] sm:$0xff]  }
 0x8c0   : > { %v4218_v40 = vpop.eup %4217 }
 0x8c1   : > { %v2358_v41 = vsel %vm867_vm3, %v4218_v40, 0.0 }
 0x8c2   : > { %2359 = vadd.xlane.f32.xlu0 %v2358_v41 }
 0x8c4   : > { %v4220_v43 = vpop.eup %4219 }
 0x8c5   : > { %v2361_v47 = vsel %vm867_vm3, %v4220_v43, 0.0 }
 0x8c6   : > { %2362 = vadd.xlane.f32.xlu1 %v2361_v47  ;;  %v1869_v47 = vadd.f32 %v4759_v45, %v4775_v18  ;;  %v1872_v45 = vadd.f32 %v4766_v50, %v4782_v26 }
 0x8c8   : > { %v4222_v9 = vpop.eup %4221 }
 0x8c9   : > { %v2364_v10 = vsel %vm867_vm3, %v4222_v9, 0.0 }
 0x8ca   : > { %2365 = vadd.xlane.f32.xlu0 %v2364_v10 }
 0x8cc   : > { %v4224_v51 = vpop.eup %4223 }
 0x8cd   : > { %v2367_v11 = vsel %vm867_vm3, %v4224_v51, 0.0 }
 0x8ce   : > { %2368 = vadd.xlane.f32.xlu1 %v2367_v11  ;;  %v1880_v11 = vadd.f32 %v4764_v49, %v4780_v21 }
 0x94b   : > { %v2360_v52 = vpop.xlane.xlu0 %2359 }
 0x94c   : > { %4225 = vrcp.f32 %v2360_v52 }
 0x94f   : > { %v2363_v54 = vpop.xlane.xlu1 %2362 }
 0x950   : > { %4227 = vrcp.f32 %v2363_v54 }
 0x953   : > { %v2366_v55 = vpop.xlane.xlu0 %2365 }
 0x954   : > { %4229 = vrcp.f32 %v2366_v55 }
 0x957   : > { %v2369_v56 = vpop.xlane.xlu1 %2368 }
 0x958   : > { %4231 = vrcp.f32 %v2369_v56 }
 0x959   : > { %v4226_v58 = vpop.eup %4225 }
 0x95a   : > { %v2374_v60 = vmul.f32 %v4226_v58, %v4218_v40  ;;  %v1877_v40 = vadd.f32 %v4757_v8, %v4773_v15  ;;  %v3579_v8 = vld [vmem:[%s5040_s3 + $0x3] sm:$0x1] }
 0x95c   : > { %v2378_v17 = vpack.c.bf16 %v2374_v60, %v2374_v60  ;;  %v2627_v60 = vunpack.c.l.bf16 %v3579_v8 }
 0x95d   : > { %v4228_v20 = vpop.eup %4227 }
 0x95e   : > { %3995 = vmatmul.mubr.msk.bf16.vlgmr.msra.gmra.mxu1 %vm867_vm3, %v2378_v17  ;;  %v2375_v22 = vmul.f32 %v4228_v20, %v4220_v43 }
 0x95f   : > { %4005 = vmatpush3.bf16.msra.mxu1 %v2148_v3  ;;  %4006 = vmatprep.mubr.msk.bf16.mxu1 %vm4318_vm1, %v4317_v12  ;;  %v4180_v3 = vld [vmem:[%s5039_s2 + $0x38] sm:$0xff]  }
 0x960   : > { %v2379_v25 = vpack.c.bf16 %v2375_v22, %v2375_v22  ;;  %4110 = vmatprep.subr.msk.bf16.mxu1 %vm1772_vm4, %v3572_v53  ;;  %v2631_v22 = vrot.slane %v2627_v60, %v4496_v16 }
 0x961   : > { %v4230_v28 = vpop.eup %4229 }
 0x962   : > { %4001 = vmatmul.mubr.msk.bf16.vlgmr.msra.gmra.mxu0 %vm867_vm3, %v2379_v25  ;;  %v2376_v29 = vmul.f32 %v4230_v28, %v4222_v9 }
 0x963   : > { %4011 = vmatpush3.bf16.msra.mxu0 %v2149_v63  ;;  %4012 = vmatprep.mubr.msk.bf16.mxu0 %vm4318_vm1, %v4317_v12  ;;  %v4179_v63 = vld [vmem:[%s5041_s4 + $0x38] sm:$0xff]  }
 0x964   : > { %v2380_v62 = vpack.c.bf16 %v2376_v29, %v2376_v29  ;;  %4022 = vmatprep.subr.bf16.mxu0 %v4180_v3 }
 0x965   : > { %v4232_v2 = vpop.eup %4231 }
 0x966   : > { %4007 = vmatmul.mubr.msk.bf16.vlgmr.msra.gmra.mxu1 %vm867_vm3, %v2380_v62  ;;  %v2377_v57 = vmul.f32 %v4232_v2, %v4224_v51  ;;  %v3588_v51 = vld [vmem:[%s5042_s5 + $0x3] sm:$0x1] }
 0x967   : > { %4017 = vmatpush3.bf16.msra.mxu1 %v2565_v59  ;;  %v2704_v55 = vunpack.c.l.bf16 %v3588_v51 }
 0x968   : > { %v2381_v1 = vpack.c.bf16 %v2377_v57, %v2377_v57  ;;  %4030 = vmatprep.subr.bf16.mxu1 %v4179_v63 }
 0x969   : > { %v2708_v21 = vrot.slane %v2704_v55, %v4496_v16 }
 0x96a   : > { %4013 = vmatmul.mubr.msk.bf16.vlgmr.msra.gmra.mxu0 %vm867_vm3, %v2381_v1 }
 0x96b   : > { %4026 = vmatprep.mubr.msk.bf16.mxu0 %vm404_vm0, %v4731_v39  ;;  %4023 = vmatpush3.bf16.msra.mxu0 %v4180_v3  ;;  %v4182_v39 = vld [vmem:[%s5039_s2 + $0x30] sm:$0xff]  }
 0x96c   : > { %4024 = vmatprep.subr.bf16.mxu0 %v4182_v39 }
 0x96f   : > { %4025 = vmatpush3.bf16.msra.mxu0 %v4182_v39 }
 0x972   : > { %4027 = vmatmul.mubr.msk.bf16.vlgmr.msra.gmra.mxu0 %vm404_vm0, %v4251_v4 }
 0x973   : > { %4046 = vmatprep.mubr.msk.bf16.mxu0 %vm404_vm0, %v4744_v44 }
 0xa1e   : > { %v2419_v0 = vpop.f32.mrf.mxu1 }
 0xa20   : > { %v3996_v27 = vpop.f32.mrf.mxu1 }
 0xa22   : > { %v2422_v36 = vpop.f32.mrf.mxu1  ;;  %v2462_v7 = vpop.f32.mrf.mxu0 }
 0xa23   : > { %v2554_v38 = vpack.c.bf16 %v2462_v7, %v2419_v0 }
 0xa24   : > { %v3997_v42 = vpop.f32.mrf.mxu1  ;;  %v4002_v46 = vpop.f32.mrf.mxu0 }
 0xa25   : > { %4018 = vmatprep.mubr.msk.bf16.mxu1 %vm682_vm2, %v2554_v38 }
 0xa26   : > { %v2465_v48 = vpop.f32.mrf.mxu0  ;;  %v2505_v13 = vpop.f32.mrf.mxu1 }
 0xa28   : > { %v4003_v14 = vpop.f32.mrf.mxu0  ;;  %v4008_v30 = vpop.f32.mrf.mxu1 }
 0xa2a   : > { %v2508_v31 = vpop.f32.mrf.mxu1  ;;  %v2548_v32 = vpop.f32.mrf.mxu0 }
 0xa2b   : > { %v2555_v61 = vpack.c.bf16 %v2548_v32, %v2505_v13 }
 0xa2c   : > { %v4009_v23 = vpop.f32.mrf.mxu1  ;;  %v4014_v33 = vpop.f32.mrf.mxu0 }
 0xa2d   : > { %4019 = vmatmul.mubr.msk.bf16.vlgmr.msra.gmra.mxu1 %vm682_vm2, %v2555_v61 }
 0xa2e   : > { %v2551_v34 = vpop.f32.mrf.mxu0  ;;  %4031 = vmatpush3.bf16.msra.mxu1 %v4179_v63  ;;  %4034 = vmatprep.mubr.msk.bf16.mxu1 %vm404_vm0, %v4744_v44  ;;  %v4183_v44 = vld [vmem:[%s5043_s6 + $0x38] sm:$0xff]  }
 0xa2f   : > { %4032 = vmatprep.subr.bf16.mxu1 %v4181_v19  ;;  %4042 = vmatprep.subr.bf16.mxu0 %v4183_v44 }
 0xa30   : > { %v4015_v6 = vpop.f32.mrf.mxu0  ;;  %4043 = vmatpush3.bf16.msra.mxu0 %v4183_v44 }
 0xa31   : > { %4044 = vmatprep.subr.bf16.mxu0 %v4184_v37 }
 0xa32   : > { %4033 = vmatpush3.bf16.msra.mxu1 %v4181_v19  ;;  %v4028_v43 = vpop.f32.mrf.mxu0 }
 0xa33   : > { %4054 = vmatprep.subr.bf16.mxu1 %v4317_v12  ;;  %v2687_v31 = vadd.f32 %v4028_v43, %v2631_v22 }
 0xa34   : > { %4045 = vmatpush3.bf16.msra.mxu0 %v4184_v37  ;;  %v2678_v15 = vpop.f32.mrf.mxu0 }
 0xa35   : > { %4035 = vmatmul.mubr.msk.bf16.vlgmr.msra.gmra.mxu1 %vm404_vm0, %v4252_v5  ;;  %4060 = vmatprep.subr.bf16.mxu0 %v4317_v12  ;;  %v2679_v59 = vadd.f32 %v2678_v15, %v2631_v22  ;;  %v2695_v34 = vmul.f32 0.35355338, %v2687_v31 }
 0xa36   : > { %4038 = vmatprep.mubr.msk.bf16.mxu1 %vm404_vm0, %v4253_v24  ;;  %v4029_v49 = vpop.f32.mrf.mxu0 }
 0xa37   : > { %4047 = vmatmul.mubr.msk.bf16.vlgmr.msra.gmra.mxu0 %vm404_vm0, %v4252_v5  ;;  %v2693_v36 = vmul.f32 0.35355338, %v2679_v59  ;;  %v2690_v42 = vadd.f32 %v4029_v49, %v2631_v22  ;;  %v2877_v5 = vpack.c.bf16 %v2695_v34, %v2695_v34 }
 0xa38   : > { %4050 = vmatprep.mubr.msk.bf16.mxu0 %vm404_vm0, %v4253_v24  ;;  %v2681_v28 = vpop.f32.mrf.mxu0  ;;  %v3599_v24 = vld [vmem:[%s5044_s7 + $0x3] sm:$0x1] }
 0xa39   : > { %v2682_v1 = vadd.f32 %v2681_v28, %v2631_v22  ;;  %v2875_v32 = vpack.c.bf16 %v2693_v36, %v2693_v36  ;;  %v2696_v23 = vmul.f32 0.35355338, %v2690_v42 }
 0xa3b   : > { %v2694_v4 = vmul.f32 0.35355338, %v2682_v1  ;;  %v2878_v6 = vpack.c.bf16 %v2696_v23, %v2696_v23 }
 0xa3d   : > { %4039 = vmatmul.mubr.msk.bf16.gmra.mxu1 %vm404_vm0, %v4254_v35  ;;  %v2876_v48 = vpack.c.bf16 %v2694_v4, %v2694_v4 }
 0xa3e   : > { %4056 = vmatprep.mubr.msk.bf16.mxu1 %vm4318_vm1, %v4317_v12 }
 0xa3f   : > { %4051 = vmatmul.mubr.msk.bf16.gmra.mxu0 %vm404_vm0, %v4254_v35  ;;  %v2793_v35 = vunpack.c.l.bf16 %v3599_v24 }
 0xa40   : > { %4062 = vmatprep.mubr.msk.bf16.mxu0 %vm4318_vm1, %v4317_v12 }
 0xa41   : > { %v2797_v44 = vrot.slane %v2793_v35, %v4496_v16 }
 0xaed   : > { %v4020_v41 = vpop.f32.mrf.mxu1 }
 0xaee   : > { %v4893_v9 = vadd.f32 %v4020_v41, %v1877_v40 }
 0xaef   : > { %v2601_v10 = vpop.f32.mrf.mxu1 }
 0xaf0   : > { %v4900_v52 = vadd.f32 %v2601_v10, %v1869_v47 }
 0xaf1   : > { %v4021_v54 = vpop.f32.mrf.mxu1 }
 0xaf2   : > { %v4907_v18 = vadd.f32 %v4021_v54, %v1880_v11 }
 0xaf3   : > { %v2604_v56 = vpop.f32.mrf.mxu1 }
 0xaf4   : > { %v4909_v58 = vadd.f32 %v2604_v56, %v1872_v45 }
 0xaf5   : > { %v4036_v17 = vpop.f32.mrf.mxu1 }
 0xaf6   : > { %v2764_v29 = vadd.f32 %v4036_v17, %v2708_v21 }
 0xaf7   : > { %v2755_v20 = vpop.f32.mrf.mxu1  ;;  %v4048_v37 = vpop.f32.mrf.mxu0 }
 0xaf8   : > { %v2756_v50 = vadd.f32 %v2755_v20, %v2708_v21  ;;  %v2853_v41 = vadd.f32 %v4048_v37, %v2797_v44 }
 0xaf9   : > { %v4037_v25 = vpop.f32.mrf.mxu1  ;;  %v2844_v40 = vpop.f32.mrf.mxu0 }
 0xafa   : > { %v2767_v62 = vadd.f32 %v4037_v25, %v2708_v21  ;;  %v2845_v47 = vadd.f32 %v2844_v40, %v2797_v44 }
 0xafb   : > { %v2758_v2 = vpop.f32.mrf.mxu1  ;;  %v4049_v43 = vpop.f32.mrf.mxu0 }
 0xafc   : > { %v2880_v26 = vpack.c.bf16 %v2767_v62, %v2764_v29  ;;  %v2759_v57 = vadd.f32 %v2758_v2, %v2708_v21  ;;  %v2856_v10 = vadd.f32 %v4049_v43, %v2797_v44 }
 0xafd   : > { %v4040_v53 = vpop.f32.mrf.mxu1  ;;  %v2847_v51 = vpop.f32.mrf.mxu0 }
 0xafe   : > { %v2879_v63 = vpack.c.bf16 %v2759_v57, %v2756_v50  ;;  %v2937_v3 = vsel %vm682_vm2, %v2880_v26, 0  ;;  %v2780_v7 = vadd.f32 %v4040_v53, %v2708_v21  ;;  %v2884_v11 = vpack.c.bf16 %v2856_v10, %v2853_v41 }
 0xaff   : > { %v2771_v39 = vpop.f32.mrf.mxu1  ;;  %4061 = vmatpush3.bf16.xpose.msra.mxu0 %v2937_v3  ;;  %v2848_v54 = vadd.f32 %v2847_v51, %v2797_v44  ;;  %v4052_v8 = vpop.f32.mrf.mxu0 }
 0xb00   : > { %v2891_v0 = vsel %vm682_vm2, %v2879_v63, 0  ;;  %4072 = vmatprep.subr.bf16.mxu0 %v4317_v12  ;;  %v2772_v13 = vadd.f32 %v2771_v39, %v2708_v21  ;;  %v4937_v45 = vadd.f32 %v4052_v8, %v2797_v44 }
 0xb01   : > { %v4041_v27 = vpop.f32.mrf.mxu1  ;;  %4055 = vmatpush3.bf16.xpose.msra.mxu1 %v2891_v0  ;;  %v2883_v15 = vpack.c.bf16 %v2848_v54, %v2845_v47  ;;  %v2860_v55 = vpop.f32.mrf.mxu0 }
 0xb02   : > { %v2783_v38 = vadd.f32 %v4041_v27, %v2708_v21  ;;  %4066 = vmatprep.subr.bf16.mxu1 %v4317_v12  ;;  %v4940_v56 = vadd.f32 %v2860_v55, %v2797_v44 }
 0xb03   : > { %v2774_v46 = vpop.f32.mrf.mxu1  ;;  %v4053_v16 = vpop.f32.mrf.mxu0 }
 0xb04   : > { %v2882_v14 = vpack.c.bf16 %v2783_v38, %v2780_v7  ;;  %v2775_v30 = vadd.f32 %v2774_v46, %v2708_v21  ;;  %v4943_v60 = vadd.f32 %v4053_v16, %v2797_v44 }
 0xb05   : > { %v2863_v17 = vpop.f32.mrf.mxu0 }
 0xb06   : > { %v2881_v61 = vpack.c.bf16 %v2775_v30, %v2772_v13  ;;  %4063 = vmatmul.mubr.msk.bf16.vlgmr.msra.gmra.mxu0 %vm682_vm2, %v2876_v48  ;;  %v3029_v19 = vsel %vm682_vm2, %v2882_v14, 0  ;;  %v2886_v49 = vpack.c.bf16 %v4943_v60, %v4937_v45  ;;  %v4947_v21 = vadd.f32 %v2863_v17, %v2797_v44  ;;  %v3614_v60 = vld [vmem:[%s5045_s8 + $0xc] sm:$0xf] }
 0xb07   : > { %4073 = vmatpush3.bf16.xpose.msra.mxu0 %v3029_v19  ;;  %4074 = vmatprep.mubr.msk.bf16.mxu0 %vm4318_vm1, %v4317_v12 }
 0xb08   : > { %4057 = vmatmul.mubr.msk.bf16.vlgmr.msra.gmra.mxu1 %vm682_vm2, %v2875_v32  ;;  %v2983_v33 = vsel %vm682_vm2, %v2881_v61, 0  ;;  %4084 = vmatprep.subr.bf16.mxu0 %v4317_v12  ;;  %v2885_v20 = vpack.c.bf16 %v4947_v21, %v4940_v56  ;;  %v3302_v56 = vsel %vm1772_vm4, %v3614_v60, 0 }
 0xb09   : > { %4067 = vmatpush3.bf16.xpose.msra.mxu1 %v2983_v33  ;;  %4068 = vmatprep.mubr.msk.bf16.mxu1 %vm4318_vm1, %v4317_v12 }
 0xb0a   : > { %4078 = vmatprep.subr.bf16.mxu1 %v4317_v12 }
 0xb0e   : > { %4075 = vmatmul.mubr.msk.bf16.vlgmr.msra.gmra.mxu0 %vm682_vm2, %v2878_v6 }
 0xb0f   : > { %4086 = vmatprep.mubr.msk.bf16.mxu0 %vm4318_vm1, %v4317_v12  ;;  %4085 = vmatpush3.bf16.msra.mxu0 %v2884_v11 }
 0xb10   : > { %4069 = vmatmul.mubr.msk.bf16.vlgmr.msra.gmra.mxu1 %vm682_vm2, %v2877_v5  ;;  %4096 = vmatprep.subr.bf16.mxu0 %v4317_v12 }
 0xb11   : > { %4080 = vmatprep.mubr.msk.bf16.mxu1 %vm4318_vm1, %v4317_v12  ;;  %4079 = vmatpush3.bf16.msra.mxu1 %v2883_v15 }
 0xb12   : > { %4090 = vmatprep.subr.bf16.mxu1 %v4317_v12 }
 0xbc6   : > { %v2973_v22 = vpop.f32.mrf.mxu0 }
 0xbc7   : > { %v3074_v25 = vsel %vm867_vm3, %v2973_v22, -inf }
 0xbc8   : > { %3075 = vmax.xlane.f32.xlu1 %v3074_v25  ;;  %v2927_v28 = vpop.f32.mrf.mxu1  ;;  %v4064_v29 = vpop.f32.mrf.mxu0 }
 0xbc9   : > { %v3071_v62 = vsel %vm867_vm3, %v2927_v28, -inf }
 0xbca   : > { %v2976_v2 = vpop.f32.mrf.mxu0  ;;  %3072 = vmax.xlane.f32.xlu0 %v3071_v62  ;;  %v4058_v50 = vpop.f32.mrf.mxu1 }
 0xbcc   : > { %v2930_v26 = vpop.f32.mrf.mxu1  ;;  %v4065_v57 = vpop.f32.mrf.mxu0 }
 0xbce   : > { %v4059_v1 = vpop.f32.mrf.mxu1  ;;  %v3065_v53 = vpop.f32.mrf.mxu0 }
 0xbcf   : > { %v3080_v59 = vsel %vm867_vm3, %v3065_v53, -inf }
 0xbd0   : > { %3081 = vmax.xlane.f32.xlu1 %v3080_v59  ;;  %v3019_v63 = vpop.f32.mrf.mxu1  ;;  %v4076_v3 = vpop.f32.mrf.mxu0 }
 0xbd1   : > { %v3077_v39 = vsel %vm867_vm3, %v3019_v63, -inf }
 0xbd2   : > { %v3068_v4 = vpop.f32.mrf.mxu0  ;;  %3078 = vmax.xlane.f32.xlu0 %v3077_v39  ;;  %v4070_v0 = vpop.f32.mrf.mxu1 }
 0xbd4   : > { %v3022_v27 = vpop.f32.mrf.mxu1  ;;  %v4077_v36 = vpop.f32.mrf.mxu0 }
 0xbd6   : > { %v4071_v7 = vpop.f32.mrf.mxu1 }
 0xc51   : > { %v3076_v38 = vpop.xlane.xlu1 %3075 }
 0xc52   : > { %v3084_v42 = vsub.f32 %v2973_v22, %v3076_v38 }
 0xc53   : > { %v3073_v46 = vpop.xlane.xlu0 %3072 }
 0xc54   : > { %v3089_v48 = vmul.f32 1.442695, %v3084_v42  ;;  %v3083_v13 = vsub.f32 %v2927_v28, %v3073_v46 }
 0xc56   : > { %4233 = vpow2.f32 %v3089_v48  ;;  %v3087_v14 = vmul.f32 1.442695, %v3083_v13 }
 0xc58   : > { %4235 = vpow2.f32 %v3087_v14 }
 0xc59   : > { %v3082_v30 = vpop.xlane.xlu1 %3081 }
 0xc5a   : > { %v3086_v31 = vsub.f32 %v3065_v53, %v3082_v30 }
 0xc5b   : > { %v3079_v32 = vpop.xlane.xlu0 %3078 }
 0xc5c   : > { %v3093_v61 = vmul.f32 1.442695, %v3086_v31  ;;  %v3085_v19 = vsub.f32 %v3019_v63, %v3079_v32 }
 0xc5e   : > { %4237 = vpow2.f32 %v3093_v61  ;;  %v3091_v23 = vmul.f32 1.442695, %v3085_v19 }
 0xc60   : > { %4239 = vpow2.f32 %v3091_v23 }
 0xc63   : > { %v4234_v33 = vpop.eup %4233 }
 0xc64   : > { %v3098_v34 = vsel %vm867_vm3, %v4234_v33, 0.0 }
 0xc65   : > { %v4236_v6 = vpop.eup %4235  ;;  %3099 = vadd.xlane.f32.xlu1 %v3098_v34 }
 0xc66   : > { %v3095_v5 = vsel %vm867_vm3, %v4236_v6, 0.0 }
 0xc67   : > { %3096 = vadd.xlane.f32.xlu0 %v3095_v5 }
 0xc6b   : > { %v4238_v24 = vpop.eup %4237 }
 0xc6c   : > { %v3104_v35 = vsel %vm867_vm3, %v4238_v24, 0.0 }
 0xc6d   : > { %v4240_v44 = vpop.eup %4239  ;;  %3105 = vadd.xlane.f32.xlu1 %v3104_v35 }
 0xc6e   : > { %v3101_v37 = vsel %vm867_vm3, %v4240_v44, 0.0 }
 0xc6f   : > { %3102 = vadd.xlane.f32.xlu0 %v3101_v37 }
 0xcee   : > { %v3100_v40 = vpop.xlane.xlu1 %3099 }
 0xcef   : > { %4241 = vrcp.f32 %v3100_v40 }
 0xcf0   : > { %v3097_v41 = vpop.xlane.xlu0 %3096 }
 0xcf1   : > { %4243 = vrcp.f32 %v3097_v41 }
 0xcf6   : > { %v3106_v43 = vpop.xlane.xlu1 %3105 }
 0xcf7   : > { %4245 = vrcp.f32 %v3106_v43 }
 0xcf8   : > { %v3103_v47 = vpop.xlane.xlu0 %3102 }
 0xcf9   : > { %4247 = vrcp.f32 %v3103_v47 }
 0xcfc   : > { %v4242_v10 = vpop.eup %4241 }
 0xcfd   : > { %v3112_v51 = vmul.f32 %v4242_v10, %v4234_v33 }
 0xcfe   : > { %v4244_v11 = vpop.eup %4243 }
 0xcff   : > { %v3116_v54 = vpack.c.bf16 %v3112_v51, %v3112_v51  ;;  %v3111_v8 = vmul.f32 %v4244_v11, %v4236_v6 }
 0xd01   : > { %4087 = vmatmul.mubr.msk.bf16.vlgmr.msra.gmra.mxu0 %vm867_vm3, %v3116_v54  ;;  %v3115_v15 = vpack.c.bf16 %v3111_v8, %v3111_v8 }
 0xd02   : > { %4097 = vmatpush3.bf16.msra.mxu0 %v2886_v49  ;;  %4098 = vmatprep.mubr.msk.bf16.mxu0 %vm4318_vm1, %v4317_v12 }
 0xd03   : > { %4081 = vmatmul.mubr.msk.bf16.vlgmr.msra.gmra.mxu1 %vm867_vm3, %v3115_v15 }
 0xd04   : > { %v4246_v55 = vpop.eup %4245  ;;  %4091 = vmatpush3.bf16.msra.mxu1 %v2885_v20  ;;  %4092 = vmatprep.mubr.msk.bf16.mxu1 %vm4318_vm1, %v4317_v12 }
 0xd05   : > { %v3114_v16 = vmul.f32 %v4246_v55, %v4238_v24  ;;  %4111 = vmatprep.subr.msk.bf16.mxu1 %vm1772_vm4, %v3614_v60 }
 0xd06   : > { %v4248_v17 = vpop.eup %4247 }
 0xd07   : > { %v3118_v22 = vpack.c.bf16 %v3114_v16, %v3114_v16  ;;  %v3113_v25 = vmul.f32 %v4248_v17, %v4240_v44 }
 0xd09   : > { %4099 = vmatmul.mubr.msk.bf16.vlgmr.msra.gmra.mxu0 %vm867_vm3, %v3118_v22  ;;  %v3117_v45 = vpack.c.bf16 %v3113_v25, %v3113_v25 }
 0xd0b   : > { %4093 = vmatmul.mubr.msk.bf16.vlgmr.msra.gmra.mxu1 %vm867_vm3, %v3117_v45 }
 0xd0c   : > { %4103 = vmatpush3.bf16.msra.mxu1 %v3302_v56 }
 0xdc1   : > { %v3199_v49 = vpop.f32.mrf.mxu0 }
 0xdc3   : > { %v3156_v12 = vpop.f32.mrf.mxu1  ;;  %v4088_v21 = vpop.f32.mrf.mxu0 }
 0xdc4   : > { %v3291_v20 = vpack.c.bf16 %v3199_v49, %v3156_v12 }
 0xdc5   : > { %v4082_v28 = vpop.f32.mrf.mxu1  ;;  %v3202_v29 = vpop.f32.mrf.mxu0 }
 0xdc6   : > { %4104 = vmatprep.mubr.msk.bf16.mxu1 %vm682_vm2, %v3291_v20 }
 0xdc7   : > { %v3159_v62 = vpop.f32.mrf.mxu1  ;;  %v4089_v2 = vpop.f32.mrf.mxu0 }
 0xdc9   : > { %v4083_v50 = vpop.f32.mrf.mxu1  ;;  %v3285_v26 = vpop.f32.mrf.mxu0 }
 0xdcb   : > { %v3242_v57 = vpop.f32.mrf.mxu1  ;;  %v4100_v1 = vpop.f32.mrf.mxu0 }
 0xdcc   : > { %v3292_v53 = vpack.c.bf16 %v3285_v26, %v3242_v57 }
 0xdcd   : > { %v4094_v59 = vpop.f32.mrf.mxu1  ;;  %v3288_v63 = vpop.f32.mrf.mxu0 }
 0xdce   : > { %4105 = vmatmul.mubr.msk.bf16.vlgmr.msra.gmra.mxu1 %vm682_vm2, %v3292_v53 }
 0xdcf   : > { %v3245_v3 = vpop.f32.mrf.mxu1  ;;  %v4101_v39 = vpop.f32.mrf.mxu0 }
 0xdd1   : > { %v4095_v4 = vpop.f32.mrf.mxu1 }
 0xe8e   : > { %v4106_v0 = vpop.f32.mrf.mxu1 }
 0xe8f   : > { %v3355_v27 = vadd.f32 %v4106_v0, %v4893_v9 }
 0xe90   : > { %v3338_v36 = vpop.f32.mrf.mxu1 }
 0xe91   : > { %3359 = vst.msk [vmem:[%s344_s27 + $0x10] sm:$0xff] %vm404_vm0, %v3355_v27  ;;  %v3353_v7 = vadd.f32 %v3338_v36, %v4900_v52 }
 0xe92   : > { %v4107_v38 = vpop.f32.mrf.mxu1 }
 0xe93   : > { %3357 = vst.msk [vmem:[%s344_s27] sm:$0xff] %vm404_vm0, %v3353_v7  ;;  %v3356_v42 = vadd.f32 %v4107_v38, %v4907_v18 }
 0xe94   : > { %v3341_v9 = vpop.f32.mrf.mxu1 }
 0xe95   : > { %3360 = vst.msk [vmem:[%s344_s27 + $0x18] sm:$0xff] %vm404_vm0, %v3356_v42  ;;  %v3354_v46 = vadd.f32 %v3341_v9, %v4909_v58 }
 0xe97   : > { %3358 = vst.msk [vmem:[%s344_s27 + $0x8] sm:$0xff] %vm404_vm0, %v3354_v46 }
 0xe98   : > { %4268 = shalt.err (!%p4265_p3)
}
 0xe99   : > { %s4269_s24 = scalar_lea.hbm %s4994_s16, 512  ;;  %s4273_s28 = scalar_lea.hbm %s5046_s9, 1024 }
 0xe9a   : > { %p4270_p4 = scmp.ne.s32.totalorder %s4994_s16, %s4269_s24  ;;  %p4274_p9 = scmp.lt.s32.totalorder %s4994_s16, %s5046_s9 }
 0xe9b   : > { %p4275_p10 = scmp.lt.s32.totalorder %s4273_s28, %s4269_s24 }
 0xe9c   : > { %p4271_p7 = pnand %p4270_p4, %p4410_p5 }
 0xe9d   : > { %p4276_p11 = por %p4275_p10, %p4274_p9 }
 0xe9e   : > { %p4272_p8 = pneg %p4271_p7 }
 0xea0   : > { %p4277_p12 = pnand %p4276_p11, %p4272_p8 }
 0xea2   : > { %4280 = shalt.err (!%p4277_p12)
}
 0xea3   : > { %s4320_s17 = smov 128   ;;  %s4321_s21 = smov 8  }
 0xea4   : > { %4112 = dma.vmem_to_hbm [thread:$0]  (%p4410_p5), %s4987_s23, 512, %s4994_s16, %s4997_s13, %s4320_s17, %s4320_s17, %s4321_s21  }
 0xea5 PF: > { %p4118_p13 = scmp.ge.s32.totalorder %s4315_s12, 2  ;;  %s3390_s25 = sand.u32 1, %s4303_s30  }
 0xea6   : > { %s3391_s22 = scalar_lea.sflag [#allocation3], %s3390_s25 }
 0xea7   : > { %p4115_p0 = pnand %p4118_p13, %p4414_p6 }
 0xea9   : > { %p4116_p1 = pneg %p4115_p0 }
 0xeab   : > { %4298 = dma.done.wait (%p4116_p1), %s3391_s22, 512  }
 0xeac   : > { %4300 = vsyncadd (%p4116_p1), %s3391_s22, 4294966784  ;;  %p19_p2 = scmp.ge.s32.totalorder %s4397_s15, 4   ;;  %s5049_s30 = smov %s4307_s10 }
 0xead   : > { %s5050_s10 = smov %s4311_s11  ;;  %s5051_s11 = smov %s4408_s18 }
 0xeae   : > { %s5052_s12 = smov %s4397_s15  ;;  %21 = sbr.rel (!%p19_p2) target bundleno = 3 (0x3), region = 115 }
 0xeb3   :  { %3396 = vsyncpa [#allocation3], 1 }
 0xeb4   :  { %3398 = vsyncpa [#allocation3 + $0x1], 1 }

</bundles_post_ra>
